<compile_context>
chip_gen: v5e
topology: v5e:2x2
jax: 0.10.0
libtpu: 0.0.40
codegen_flags: <defaults>
</compile_context>

<pallas_src>
import jax
import jax.numpy as jnp
from jax import lax
import numpy as np
from jax.experimental import pallas as pl
from jax.experimental.pallas import tpu as pltpu


# --------------------------- fused Pallas kernel ------------------------------

def fire_kernel(x_ref, we_ref, se_ref, be_ref, wt_ref, sx_ref, bx_ref,
                o_ref, hp_ref):
    # x_ref : [1, H, W, Cin]   one image (NHWC)
    # we_ref: [Cin, f]         squeeze 1x1 weight
    # se/be : [1, f]           folded BN scale/bias for the squeeze
    # wt_ref: [3, 3, f, 8f]    per-tap combined expand weight:
    #                          columns [:4f] = exp1 (only at centre tap),
    #                          columns [4f:] = exp3
    # sx/bx : [1, 8f]          folded BN scale/bias for [exp1 | exp3]
    # o_ref : [1, H, W, 8f]    concatenated output tile
    # hp_ref: [H+2, W+2, f]    VMEM scratch: zero-padded squeeze output (halo)
    _, H, W, Cin = x_ref.shape
    f = we_ref.shape[1]
    C8 = wt_ref.shape[-1]

    # ---- squeeze: 1x1 conv + folded BN + ReLU (stays in VMEM) ----
    x = x_ref[...].reshape(H * W, Cin)
    h = jnp.dot(x, we_ref[...], preferred_element_type=jnp.float32)
    h = jnp.maximum(h * se_ref[...] + be_ref[...], 0.0)

    # ---- pad=1 halo built in VMEM (no HBM pad pass) ----
    hp_ref[...] = jnp.zeros_like(hp_ref)
    hp_ref[1:H + 1, 1:W + 1, :] = h.reshape(H, W, f)

    # ---- both expand branches as 9 shifted matmuls into ONE 8f accumulator.
    # The centre tap (dy=dx=1) sees exactly h, so its combined weight carries
    # the exp1 1x1 conv; all taps carry the exp3 3x3 conv in the upper lanes.
    # TODO(synk): pack the dx taps into the contraction dim (im2col [H*W, 3f])
    # to cut the shifted reads 9->3 and deepen K once unaligned lane-concat is
    # exercised on the target toolchain.
    acc = jnp.zeros((H * W, C8), jnp.float32)
    for dy in range(3):
        for dx in range(3):
            patch = hp_ref[dy:dy + H, dx:dx + W, :].reshape(H * W, f)
            acc = acc + jnp.dot(patch, wt_ref[dy, dx],
                                preferred_element_type=jnp.float32)

    # ---- fused BN + ReLU epilogue, single lane-dense store of concat output
    y = jnp.maximum(acc * sx_ref[...] + bx_ref[...], 0.0)
    o_ref[...] = y.reshape(1, H, W, C8).astype(o_ref.dtype)


# --------------------------- wrapper ------------------------------------------

def _fold_bn(conv_bias, gamma, beta, mean, var, eps=1e-5):
    """Fold conv bias + inference BatchNorm into per-channel scale/bias."""
    scale = gamma / jnp.sqrt(var + eps)
    bias = scale * (conv_bias - mean) + beta
    return (scale.reshape(1, -1).astype(jnp.float32),
            bias.reshape(1, -1).astype(jnp.float32))


def fire_block(x_nchw, params):
    """FireBlock forward. x_nchw: [N, C_in, H, W] -> [N, 8*filters, H, W]."""
    N, Cin, H, W = x_nchw.shape
    e, p1, p3 = params["entry"], params["exp1"], params["exp3"]
    f = e["w"].shape[1]
    C4, C8 = 4 * f, 8 * f

    # Fold BN (inference) + conv bias for all three convs.
    se, be = _fold_bn(e["b"], e["gamma"], e["beta"], e["mean"], e["var"])
    s1, b1 = _fold_bn(p1["b"], p1["gamma"], p1["beta"], p1["mean"], p1["var"])
    s3, b3 = _fold_bn(p3["b"], p3["gamma"], p3["beta"], p3["mean"], p3["var"])
    sx = jnp.concatenate([s1, s3], axis=1)      # [1, 8f]  (exp1 | exp3)
    bx = jnp.concatenate([b1, b3], axis=1)

    # Combined per-tap expand weight [3,3,f,8f]:
    #   columns [:4f]  <- exp1 1x1 weight, placed only at the centre tap
    #   columns [4f:]  <- exp3 3x3 weight
    w1_taps = jnp.zeros((3, 3, f, C4), jnp.float32).at[1, 1].set(
        p1["w"].astype(jnp.float32))
    w_taps = jnp.concatenate([w1_taps, p3["w"].astype(jnp.float32)], axis=-1)

    # TODO(synk): keep NHWC end-to-end in the surrounding model to drop these
    # two wrapper transposes (each is a full extra HBM pass done by XLA).
    x_nhwc = jnp.transpose(x_nchw, (0, 2, 3, 1))

    # TODO(synk): for production-size H*W, add a row-block grid axis with a
    # 1-row recomputed halo and bf16 activation storage on v6e/v7x.
    out = pl.pallas_call(
        fire_kernel,
        out_shape=jax.ShapeDtypeStruct((N, H, W, C8), jnp.float32),
        grid=(N,),
        in_specs=[
            pl.BlockSpec((1, H, W, Cin), lambda b: (b, 0, 0, 0)),
            pl.BlockSpec((Cin, f), lambda b: (0, 0)),
            pl.BlockSpec((1, f), lambda b: (0, 0)),
            pl.BlockSpec((1, f), lambda b: (0, 0)),
            pl.BlockSpec((3, 3, f, C8), lambda b: (0, 0, 0, 0)),
            pl.BlockSpec((1, C8), lambda b: (0, 0)),
            pl.BlockSpec((1, C8), lambda b: (0, 0)),
        ],
        out_specs=pl.BlockSpec((1, H, W, C8), lambda b: (b, 0, 0, 0)),
        scratch_shapes=[pltpu.VMEM((H + 2, W + 2, f), jnp.float32)],
        compiler_params=pltpu.CompilerParams(
            dimension_semantics=("parallel",),       # v7x: shard batch over 2 TCs
            vmem_limit_bytes=32 * 1024 * 1024,
        ),
    )(x_nhwc, e["w"].astype(jnp.float32), se, be, w_taps, sx, bx)

    return jnp.transpose(out, (0, 3, 1, 2))          # NHWC -> NCHW


# --------------------------- parameter init -----------------------------------

def make_params(c_in, filters, key):
    def bn(c, k):
        kk = jax.random.split(k, 4)
        return dict(
            gamma=1.0 + 0.1 * jax.random.normal(kk[0], (c,), jnp.float32),
            beta=0.05 * jax.random.normal(kk[1], (c,), jnp.float32),
            mean=0.01 * jax.random.normal(kk[2], (c,), jnp.float32),
            var=1.0 + 0.1 * jax.random.uniform(kk[3], (c,), jnp.float32),
        )

    k_e, k_1, k_3, k_be, k_b1, k_b3 = jax.random.split(key, 6)
    f4 = filters * 4
    params = {
        "entry": dict(
            w=0.3 * jax.random.normal(k_e, (c_in, filters), jnp.float32),
            b=0.1 * jax.random.normal(k_be, (filters,), jnp.float32),
            **bn(filters, jax.random.fold_in(key, 1))),
        "exp1": dict(
            w=0.3 * jax.random.normal(k_1, (filters, f4), jnp.float32),
            b=0.1 * jax.random.normal(k_b1, (f4,), jnp.float32),
            **bn(f4, jax.random.fold_in(key, 2))),
        "exp3": dict(
            w=0.3 * jax.random.normal(k_3, (3, 3, filters, f4), jnp.float32),
            b=0.1 * jax.random.normal(k_b3, (f4,), jnp.float32),
            **bn(f4, jax.random.fold_in(key, 3))),
    }
    return params


# --------------------------- reference (plain JAX) -----------------------------

def _ref_conv_bn_relu(x_nhwc, w4d, b, gamma, beta, mean, var, pad):
    dn = lax.conv_dimension_numbers(x_nhwc.shape, w4d.shape, ("NHWC", "HWIO", "NHWC"))
    y = lax.conv_general_dilated(x_nhwc, w4d, (1, 1), pad, dimension_numbers=dn)
    y = y + b
    y = gamma * (y - mean) / jnp.sqrt(var + 1e-5) + beta
    return jnp.maximum(y, 0.0)


def fire_block_ref(x_nchw, params):
    x = jnp.transpose(x_nchw, (0, 2, 3, 1))
    e = params["entry"]
    h = _ref_conv_bn_relu(x, e["w"].reshape(1, 1, *e["w"].shape), e["b"],
                          e["gamma"], e["beta"], e["mean"], e["var"], "VALID")
    p1 = params["exp1"]
    y1 = _ref_conv_bn_relu(h, p1["w"].reshape(1, 1, *p1["w"].shape), p1["b"],
                           p1["gamma"], p1["beta"], p1["mean"], p1["var"], "VALID")
    p3 = params["exp3"]
    y3 = _ref_conv_bn_relu(h, p3["w"], p3["b"],
                           p3["gamma"], p3["beta"], p3["mean"], p3["var"], "SAME")
    return jnp.transpose(jnp.concatenate([y1, y3], axis=-1), (0, 3, 1, 2))


# --------------------------- main ----------------------------------------------

if __name__ == "__main__":
    N, C_in, H, W = 2, 4, 16, 16
    filters = 4

    key = jax.random.PRNGKey(0)
    x = jax.random.normal(key, (N, C_in, H, W), jnp.float32)  # NCHW, like PyTorch
    params = make_params(C_in, filters, jax.random.PRNGKey(42))

    out = fire_block(x, params)
    out = jax.block_until_ready(out)

    assert out.shape == (N, 8 * filters, H, W), out.shape

    ref = jax.block_until_ready(fire_block_ref(x, params))
    np.testing.assert_allclose(np.asarray(out), np.asarray(ref), rtol=1e-4, atol=1e-4)

    print("KERNEL_OK")
</pallas_src>

<mosaic_0001>
module attributes {stable_mosaic.version = 11 : i64} {
  func.func @fire_kernel(%arg0: i32, %arg1: memref<1x16x16x4xf32, #tpu.memory_space<vmem>>, %arg2: memref<4x4xf32, #tpu.memory_space<vmem>>, %arg3: memref<1x4xf32, #tpu.memory_space<vmem>>, %arg4: memref<1x4xf32, #tpu.memory_space<vmem>>, %arg5: memref<3x3x4x32xf32, #tpu.memory_space<vmem>>, %arg6: memref<1x32xf32, #tpu.memory_space<vmem>>, %arg7: memref<1x32xf32, #tpu.memory_space<vmem>>, %arg8: memref<1x16x16x32xf32, #tpu.memory_space<vmem>>, %arg9: memref<18x18x4xf32, #tpu.memory_space<vmem>>) attributes {dimension_semantics = [#tpu.dimension_semantics<parallel>], iteration_bounds = array<i64: 2>, scalar_prefetch = 0 : i64, scratch_operands = 1 : i64, tpu.core_type = #tpu.core_type<tc>, window_params = [{transform_indices = @transform_0, window_bounds = array<i64: 1, 16, 16, 4>}, {pipeline_mode = #tpu.pipeline_mode<synchronous>, transform_indices = @transform_1, window_bounds = array<i64: 4, 4>}, {pipeline_mode = #tpu.pipeline_mode<synchronous>, transform_indices = @transform_2, window_bounds = array<i64: 1, 4>}, {pipeline_mode = #tpu.pipeline_mode<synchronous>, transform_indices = @transform_3, window_bounds = array<i64: 1, 4>}, {pipeline_mode = #tpu.pipeline_mode<synchronous>, transform_indices = @transform_4, window_bounds = array<i64: 3, 3, 4, 32>}, {pipeline_mode = #tpu.pipeline_mode<synchronous>, transform_indices = @transform_5, window_bounds = array<i64: 1, 32>}, {pipeline_mode = #tpu.pipeline_mode<synchronous>, transform_indices = @transform_6, window_bounds = array<i64: 1, 32>}, {transform_indices = @transform_7, window_bounds = array<i64: 1, 16, 16, 32>}]} {
    %c0 = arith.constant 0 : index
    %c0_0 = arith.constant 0 : index
    %c0_1 = arith.constant 0 : index
    %c0_2 = arith.constant 0 : index
    %0 = vector.load %arg1[%c0, %c0_0, %c0_1, %c0_2] : memref<1x16x16x4xf32, #tpu.memory_space<vmem>>, vector<1x16x16x4xf32>
    %1 = vector.shape_cast %0 : vector<1x16x16x4xf32> to vector<256x4xf32>
    %c0_3 = arith.constant 0 : index
    %c0_4 = arith.constant 0 : index
    %2 = vector.load %arg2[%c0_3, %c0_4] : memref<4x4xf32, #tpu.memory_space<vmem>>, vector<4x4xf32>
    %cst = arith.constant dense<0.000000e+00> : vector<256x4xf32>
    %3 = tpu.matmul %1, %2, %cst {dimension_numbers = #tpu.dot_dimension_numbers<[1], [0], [0], [1], [0, 0, 1, 1], [], []>} : vector<256x4xf32>, vector<4x4xf32>, vector<256x4xf32> -> vector<256x4xf32>
    %c0_5 = arith.constant 0 : index
    %c0_6 = arith.constant 0 : index
    %4 = vector.load %arg3[%c0_5, %c0_6] : memref<1x4xf32, #tpu.memory_space<vmem>>, vector<1x4xf32>
    %5 = vector.broadcast %4 : vector<1x4xf32> to vector<256x4xf32>
    %6 = arith.mulf %3, %5 : vector<256x4xf32>
    %c0_7 = arith.constant 0 : index
    %c0_8 = arith.constant 0 : index
    %7 = vector.load %arg4[%c0_7, %c0_8] : memref<1x4xf32, #tpu.memory_space<vmem>>, vector<1x4xf32>
    %8 = vector.broadcast %7 : vector<1x4xf32> to vector<256x4xf32>
    %9 = arith.addf %6, %8 : vector<256x4xf32>
    %cst_9 = arith.constant 0.000000e+00 : f32
    %10 = vector.broadcast %cst_9 : f32 to vector<256x4xf32>
    %11 = arith.maximumf %9, %10 : vector<256x4xf32>
    %cst_10 = arith.constant 0.000000e+00 : f32
    %12 = vector.broadcast %cst_10 : f32 to vector<18x18x4xf32>
    %c0_11 = arith.constant 0 : index
    %c0_12 = arith.constant 0 : index
    %c0_13 = arith.constant 0 : index
    %13 = vector.load %arg9[%c0_11, %c0_12, %c0_13] : memref<18x18x4xf32, #tpu.memory_space<vmem>>, vector<18x18x4xf32>
    tpu.vector_store %arg9[%c0_11, %c0_12, %c0_13], %12 {strides = array<i32>} : memref<18x18x4xf32, #tpu.memory_space<vmem>>, vector<18x18x4xf32>,
    %14 = vector.shape_cast %11 : vector<256x4xf32> to vector<16x16x4xf32>
    %c1 = arith.constant 1 : index
    %c1_14 = arith.constant 1 : index
    %c0_15 = arith.constant 0 : index
    %15 = vector.load %arg9[%c1, %c1_14, %c0_15] : memref<18x18x4xf32, #tpu.memory_space<vmem>>, vector<16x16x4xf32>
    tpu.vector_store %arg9[%c1, %c1_14, %c0_15], %14 {strides = array<i32>} : memref<18x18x4xf32, #tpu.memory_space<vmem>>, vector<16x16x4xf32>,
    %cst_16 = arith.constant 0.000000e+00 : f32
    %16 = vector.broadcast %cst_16 : f32 to vector<256x32xf32>
    %c0_17 = arith.constant 0 : index
    %c0_18 = arith.constant 0 : index
    %c0_19 = arith.constant 0 : index
    %17 = vector.load %arg9[%c0_17, %c0_18, %c0_19] : memref<18x18x4xf32, #tpu.memory_space<vmem>>, vector<16x16x4xf32>
    %18 = vector.shape_cast %17 : vector<16x16x4xf32> to vector<256x4xf32>
    %c0_20 = arith.constant 0 : index
    %c0_21 = arith.constant 0 : index
    %c0_22 = arith.constant 0 : index
    %c0_23 = arith.constant 0 : index
    %19 = vector.load %arg5[%c0_20, %c0_21, %c0_22, %c0_23] : memref<3x3x4x32xf32, #tpu.memory_space<vmem>>, vector<1x1x4x32xf32>
    %20 = vector.shape_cast %19 : vector<1x1x4x32xf32> to vector<4x32xf32>
    %cst_24 = arith.constant dense<0.000000e+00> : vector<256x32xf32>
    %21 = tpu.matmul %18, %20, %cst_24 {dimension_numbers = #tpu.dot_dimension_numbers<[1], [0], [0], [1], [0, 0, 1, 1], [], []>} : vector<256x4xf32>, vector<4x32xf32>, vector<256x32xf32> -> vector<256x32xf32>
    %22 = arith.addf %16, %21 : vector<256x32xf32>
    %c0_25 = arith.constant 0 : index
    %c1_26 = arith.constant 1 : index
    %c0_27 = arith.constant 0 : index
    %23 = vector.load %arg9[%c0_25, %c1_26, %c0_27] : memref<18x18x4xf32, #tpu.memory_space<vmem>>, vector<16x16x4xf32>
    %24 = vector.shape_cast %23 : vector<16x16x4xf32> to vector<256x4xf32>
    %c0_28 = arith.constant 0 : index
    %c1_29 = arith.constant 1 : index
    %c0_30 = arith.constant 0 : index
    %c0_31 = arith.constant 0 : index
    %25 = vector.load %arg5[%c0_28, %c1_29, %c0_30, %c0_31] : memref<3x3x4x32xf32, #tpu.memory_space<vmem>>, vector<1x1x4x32xf32>
    %26 = vector.shape_cast %25 : vector<1x1x4x32xf32> to vector<4x32xf32>
    %cst_32 = arith.constant dense<0.000000e+00> : vector<256x32xf32>
    %27 = tpu.matmul %24, %26, %cst_32 {dimension_numbers = #tpu.dot_dimension_numbers<[1], [0], [0], [1], [0, 0, 1, 1], [], []>} : vector<256x4xf32>, vector<4x32xf32>, vector<256x32xf32> -> vector<256x32xf32>
    %28 = arith.addf %22, %27 : vector<256x32xf32>
    %c0_33 = arith.constant 0 : index
    %c2 = arith.constant 2 : index
    %c0_34 = arith.constant 0 : index
    %29 = vector.load %arg9[%c0_33, %c2, %c0_34] : memref<18x18x4xf32, #tpu.memory_space<vmem>>, vector<16x16x4xf32>
    %30 = vector.shape_cast %29 : vector<16x16x4xf32> to vector<256x4xf32>
    %c0_35 = arith.constant 0 : index
    %c2_36 = arith.constant 2 : index
    %c0_37 = arith.constant 0 : index
    %c0_38 = arith.constant 0 : index
    %31 = vector.load %arg5[%c0_35, %c2_36, %c0_37, %c0_38] : memref<3x3x4x32xf32, #tpu.memory_space<vmem>>, vector<1x1x4x32xf32>
    %32 = vector.shape_cast %31 : vector<1x1x4x32xf32> to vector<4x32xf32>
    %cst_39 = arith.constant dense<0.000000e+00> : vector<256x32xf32>
    %33 = tpu.matmul %30, %32, %cst_39 {dimension_numbers = #tpu.dot_dimension_numbers<[1], [0], [0], [1], [0, 0, 1, 1], [], []>} : vector<256x4xf32>, vector<4x32xf32>, vector<256x32xf32> -> vector<256x32xf32>
    %34 = arith.addf %28, %33 : vector<256x32xf32>
    %c1_40 = arith.constant 1 : index
    %c0_41 = arith.constant 0 : index
    %c0_42 = arith.constant 0 : index
    %35 = vector.load %arg9[%c1_40, %c0_41, %c0_42] : memref<18x18x4xf32, #tpu.memory_space<vmem>>, vector<16x16x4xf32>
    %36 = vector.shape_cast %35 : vector<16x16x4xf32> to vector<256x4xf32>
    %c1_43 = arith.constant 1 : index
    %c0_44 = arith.constant 0 : index
    %c0_45 = arith.constant 0 : index
    %c0_46 = arith.constant 0 : index
    %37 = vector.load %arg5[%c1_43, %c0_44, %c0_45, %c0_46] : memref<3x3x4x32xf32, #tpu.memory_space<vmem>>, vector<1x1x4x32xf32>
    %38 = vector.shape_cast %37 : vector<1x1x4x32xf32> to vector<4x32xf32>
    %cst_47 = arith.constant dense<0.000000e+00> : vector<256x32xf32>
    %39 = tpu.matmul %36, %38, %cst_47 {dimension_numbers = #tpu.dot_dimension_numbers<[1], [0], [0], [1], [0, 0, 1, 1], [], []>} : vector<256x4xf32>, vector<4x32xf32>, vector<256x32xf32> -> vector<256x32xf32>
    %40 = arith.addf %34, %39 : vector<256x32xf32>
    %c1_48 = arith.constant 1 : index
    %c1_49 = arith.constant 1 : index
    %c0_50 = arith.constant 0 : index
    %41 = vector.load %arg9[%c1_48, %c1_49, %c0_50] : memref<18x18x4xf32, #tpu.memory_space<vmem>>, vector<16x16x4xf32>
    %42 = vector.shape_cast %41 : vector<16x16x4xf32> to vector<256x4xf32>
    %c1_51 = arith.constant 1 : index
    %c1_52 = arith.constant 1 : index
    %c0_53 = arith.constant 0 : index
    %c0_54 = arith.constant 0 : index
    %43 = vector.load %arg5[%c1_51, %c1_52, %c0_53, %c0_54] : memref<3x3x4x32xf32, #tpu.memory_space<vmem>>, vector<1x1x4x32xf32>
    %44 = vector.shape_cast %43 : vector<1x1x4x32xf32> to vector<4x32xf32>
    %cst_55 = arith.constant dense<0.000000e+00> : vector<256x32xf32>
    %45 = tpu.matmul %42, %44, %cst_55 {dimension_numbers = #tpu.dot_dimension_numbers<[1], [0], [0], [1], [0, 0, 1, 1], [], []>} : vector<256x4xf32>, vector<4x32xf32>, vector<256x32xf32> -> vector<256x32xf32>
    %46 = arith.addf %40, %45 : vector<256x32xf32>
    %c1_56 = arith.constant 1 : index
    %c2_57 = arith.constant 2 : index
    %c0_58 = arith.constant 0 : index
    %47 = vector.load %arg9[%c1_56, %c2_57, %c0_58] : memref<18x18x4xf32, #tpu.memory_space<vmem>>, vector<16x16x4xf32>
    %48 = vector.shape_cast %47 : vector<16x16x4xf32> to vector<256x4xf32>
    %c1_59 = arith.constant 1 : index
    %c2_60 = arith.constant 2 : index
    %c0_61 = arith.constant 0 : index
    %c0_62 = arith.constant 0 : index
    %49 = vector.load %arg5[%c1_59, %c2_60, %c0_61, %c0_62] : memref<3x3x4x32xf32, #tpu.memory_space<vmem>>, vector<1x1x4x32xf32>
    %50 = vector.shape_cast %49 : vector<1x1x4x32xf32> to vector<4x32xf32>
    %cst_63 = arith.constant dense<0.000000e+00> : vector<256x32xf32>
    %51 = tpu.matmul %48, %50, %cst_63 {dimension_numbers = #tpu.dot_dimension_numbers<[1], [0], [0], [1], [0, 0, 1, 1], [], []>} : vector<256x4xf32>, vector<4x32xf32>, vector<256x32xf32> -> vector<256x32xf32>
    %52 = arith.addf %46, %51 : vector<256x32xf32>
    %c2_64 = arith.constant 2 : index
    %c0_65 = arith.constant 0 : index
    %c0_66 = arith.constant 0 : index
    %53 = vector.load %arg9[%c2_64, %c0_65, %c0_66] : memref<18x18x4xf32, #tpu.memory_space<vmem>>, vector<16x16x4xf32>
    %54 = vector.shape_cast %53 : vector<16x16x4xf32> to vector<256x4xf32>
    %c2_67 = arith.constant 2 : index
    %c0_68 = arith.constant 0 : index
    %c0_69 = arith.constant 0 : index
    %c0_70 = arith.constant 0 : index
    %55 = vector.load %arg5[%c2_67, %c0_68, %c0_69, %c0_70] : memref<3x3x4x32xf32, #tpu.memory_space<vmem>>, vector<1x1x4x32xf32>
    %56 = vector.shape_cast %55 : vector<1x1x4x32xf32> to vector<4x32xf32>
    %cst_71 = arith.constant dense<0.000000e+00> : vector<256x32xf32>
    %57 = tpu.matmul %54, %56, %cst_71 {dimension_numbers = #tpu.dot_dimension_numbers<[1], [0], [0], [1], [0, 0, 1, 1], [], []>} : vector<256x4xf32>, vector<4x32xf32>, vector<256x32xf32> -> vector<256x32xf32>
    %58 = arith.addf %52, %57 : vector<256x32xf32>
    %c2_72 = arith.constant 2 : index
    %c1_73 = arith.constant 1 : index
    %c0_74 = arith.constant 0 : index
    %59 = vector.load %arg9[%c2_72, %c1_73, %c0_74] : memref<18x18x4xf32, #tpu.memory_space<vmem>>, vector<16x16x4xf32>
    %60 = vector.shape_cast %59 : vector<16x16x4xf32> to vector<256x4xf32>
    %c2_75 = arith.constant 2 : index
    %c1_76 = arith.constant 1 : index
    %c0_77 = arith.constant 0 : index
    %c0_78 = arith.constant 0 : index
    %61 = vector.load %arg5[%c2_75, %c1_76, %c0_77, %c0_78] : memref<3x3x4x32xf32, #tpu.memory_space<vmem>>, vector<1x1x4x32xf32>
    %62 = vector.shape_cast %61 : vector<1x1x4x32xf32> to vector<4x32xf32>
    %cst_79 = arith.constant dense<0.000000e+00> : vector<256x32xf32>
    %63 = tpu.matmul %60, %62, %cst_79 {dimension_numbers = #tpu.dot_dimension_numbers<[1], [0], [0], [1], [0, 0, 1, 1], [], []>} : vector<256x4xf32>, vector<4x32xf32>, vector<256x32xf32> -> vector<256x32xf32>
    %64 = arith.addf %58, %63 : vector<256x32xf32>
    %c2_80 = arith.constant 2 : index
    %c2_81 = arith.constant 2 : index
    %c0_82 = arith.constant 0 : index
    %65 = vector.load %arg9[%c2_80, %c2_81, %c0_82] : memref<18x18x4xf32, #tpu.memory_space<vmem>>, vector<16x16x4xf32>
    %66 = vector.shape_cast %65 : vector<16x16x4xf32> to vector<256x4xf32>
    %c2_83 = arith.constant 2 : index
    %c2_84 = arith.constant 2 : index
    %c0_85 = arith.constant 0 : index
    %c0_86 = arith.constant 0 : index
    %67 = vector.load %arg5[%c2_83, %c2_84, %c0_85, %c0_86] : memref<3x3x4x32xf32, #tpu.memory_space<vmem>>, vector<1x1x4x32xf32>
    %68 = vector.shape_cast %67 : vector<1x1x4x32xf32> to vector<4x32xf32>
    %cst_87 = arith.constant dense<0.000000e+00> : vector<256x32xf32>
    %69 = tpu.matmul %66, %68, %cst_87 {dimension_numbers = #tpu.dot_dimension_numbers<[1], [0], [0], [1], [0, 0, 1, 1], [], []>} : vector<256x4xf32>, vector<4x32xf32>, vector<256x32xf32> -> vector<256x32xf32>
    %70 = arith.addf %64, %69 : vector<256x32xf32>
    %c0_88 = arith.constant 0 : index
    %c0_89 = arith.constant 0 : index
    %71 = vector.load %arg6[%c0_88, %c0_89] : memref<1x32xf32, #tpu.memory_space<vmem>>, vector<1x32xf32>
    %72 = vector.broadcast %71 : vector<1x32xf32> to vector<256x32xf32>
    %73 = arith.mulf %70, %72 : vector<256x32xf32>
    %c0_90 = arith.constant 0 : index
    %c0_91 = arith.constant 0 : index
    %74 = vector.load %arg7[%c0_90, %c0_91] : memref<1x32xf32, #tpu.memory_space<vmem>>, vector<1x32xf32>
    %75 = vector.broadcast %74 : vector<1x32xf32> to vector<256x32xf32>
    %76 = arith.addf %73, %75 : vector<256x32xf32>
    %cst_92 = arith.constant 0.000000e+00 : f32
    %77 = vector.broadcast %cst_92 : f32 to vector<256x32xf32>
    %78 = arith.maximumf %76, %77 : vector<256x32xf32>
    %79 = vector.shape_cast %78 : vector<256x32xf32> to vector<1x16x16x32xf32>
    %c0_93 = arith.constant 0 : index
    %c0_94 = arith.constant 0 : index
    %c0_95 = arith.constant 0 : index
    %c0_96 = arith.constant 0 : index
    %80 = vector.load %arg8[%c0_93, %c0_94, %c0_95, %c0_96] : memref<1x16x16x32xf32, #tpu.memory_space<vmem>>, vector<1x16x16x32xf32>
    tpu.vector_store %arg8[%c0_93, %c0_94, %c0_95, %c0_96], %79 {strides = array<i32>} : memref<1x16x16x32xf32, #tpu.memory_space<vmem>>, vector<1x16x16x32xf32>,
    return
  }
  func.func @transform_0(%arg0: i32) -> (i32, i32, i32, i32) {
    %c0_i32 = arith.constant 0 : i32
    %c0_i32_0 = arith.constant 0 : i32
    %c0_i32_1 = arith.constant 0 : i32
    %c0_i32_2 = arith.constant 0 : i32
    return %arg0, %c0_i32, %c0_i32_0, %c0_i32_1 : i32, i32, i32, i32
  }
  func.func @transform_1(%arg0: i32) -> (i32, i32) {
    %c0_i32 = arith.constant 0 : i32
    %c0_i32_0 = arith.constant 0 : i32
    %c0_i32_1 = arith.constant 0 : i32
    return %c0_i32, %c0_i32_0 : i32, i32
  }
  func.func @transform_2(%arg0: i32) -> (i32, i32) {
    %c0_i32 = arith.constant 0 : i32
    %c0_i32_0 = arith.constant 0 : i32
    %c0_i32_1 = arith.constant 0 : i32
    return %c0_i32, %c0_i32_0 : i32, i32
  }
  func.func @transform_3(%arg0: i32) -> (i32, i32) {
    %c0_i32 = arith.constant 0 : i32
    %c0_i32_0 = arith.constant 0 : i32
    %c0_i32_1 = arith.constant 0 : i32
    return %c0_i32, %c0_i32_0 : i32, i32
  }
  func.func @transform_4(%arg0: i32) -> (i32, i32, i32, i32) {
    %c0_i32 = arith.constant 0 : i32
    %c0_i32_0 = arith.constant 0 : i32
    %c0_i32_1 = arith.constant 0 : i32
    %c0_i32_2 = arith.constant 0 : i32
    %c0_i32_3 = arith.constant 0 : i32
    return %c0_i32, %c0_i32_0, %c0_i32_1, %c0_i32_2 : i32, i32, i32, i32
  }
  func.func @transform_5(%arg0: i32) -> (i32, i32) {
    %c0_i32 = arith.constant 0 : i32
    %c0_i32_0 = arith.constant 0 : i32
    %c0_i32_1 = arith.constant 0 : i32
    return %c0_i32, %c0_i32_0 : i32, i32
  }
  func.func @transform_6(%arg0: i32) -> (i32, i32) {
    %c0_i32 = arith.constant 0 : i32
    %c0_i32_0 = arith.constant 0 : i32
    %c0_i32_1 = arith.constant 0 : i32
    return %c0_i32, %c0_i32_0 : i32, i32
  }
  func.func @transform_7(%arg0: i32) -> (i32, i32, i32, i32) {
    %c0_i32 = arith.constant 0 : i32
    %c0_i32_0 = arith.constant 0 : i32
    %c0_i32_1 = arith.constant 0 : i32
    %c0_i32_2 = arith.constant 0 : i32
    return %arg0, %c0_i32, %c0_i32_0, %c0_i32_1 : i32, i32, i32, i32
  }
}

</mosaic_0001>

<bundles_post_ra>
// kernel: tpu_custom_call.1
= control target key start
LH: loop header
LB: loop body
LE: loop exit
PB: predicated region body
PF: predicated region fallthrough
CT: control target
= control target key end

     0   :  { %12 = vsyncpa [#allocation4], 0  ;;  %s5521_s0 = inlined_call_operand.vmem [shape: f32[2,16,16,4], index: 0, kind: input, shape index: {}]   ;;  %s5522_s1 = inlined_call_operand.vmem [shape: f32[4,4], index: 1, kind: input, shape index: {}]   ;;  %s5523_s2 = inlined_call_operand.vmem [shape: f32[1,4], index: 2, kind: input, shape index: {}]   ;;  %s5524_s3 = inlined_call_operand.vmem [shape: f32[1,4], index: 3, kind: input, shape index: {}]   ;;  %s5525_s4 = inlined_call_operand.vmem [shape: f32[3,3,4,32], index: 4, kind: input, shape index: {}]   ;;  %s5526_s5 = inlined_call_operand.vmem [shape: f32[1,32], index: 5, kind: input, shape index: {}]   ;;  %s5527_s6 = inlined_call_operand.vmem [shape: f32[1,32], index: 6, kind: input, shape index: {}]   ;;  %s5528_s7 = inlined_call_operand.hbm [shape: f32[2,16,16,32], index: 7, kind: output, shape index: {}]  }
   0x1   :  { %14 = vsyncpa [#allocation4 + $0x1], 0  ;;  %s3876_s24 = smov 0   ;;  %s3878_s25 = smov 0  }
   0x2   :  { %s3880_s26 = smov 0   ;;  %s3882_s27 = smov 0  }
   0x3 LB: > { %s3897_s28 = sadd.s32 4294967295, %s3831_s27   ;;  %s3369_s29 = sadd.s32 4294967294, %s3831_s27   ;;  %s3831_s27 = sphi %s3882_s27, %s5661_s27   ;;  %s3827_s26 = sphi %s3880_s26, %s5660_s26   ;;  %s3823_s25 = sphi %s3878_s25, %s5659_s25   ;;  %s3819_s24 = sphi %s3876_s24, %s5658_s24  }
   0x4   : > { %s3901_s30 = sadd.s32 1, %s3831_s27   ;;  %s179_s8 = sadd.s32 1, %s3827_s26 }
   0x5   : > { %s176_s9 = ssub.s32 %s3831_s27, %s3901_s30  ;;  %p189_p0 = scmp.ne.s32.totalorder %s3827_s26, %s3823_s25 }
   0x6   : > { %p177_p1 = scmp.eq.s32.totalorder %s176_s9, 0  ;;  %p190_p2 = scmp.eq.s32.totalorder %s3897_s28, 1 }
   0x7   : > { %p195_p3 = scmp.ne.s32.totalorder %s3823_s25, %s3819_s24  ;;  %p196_p4 = scmp.eq.s32.totalorder %s3369_s29, 1 }
   0x8   : > { %s3912_s10 = scalar_select %p177_p1, %s3827_s26, %s179_s8  }
   0x9   : > { %p3914_p5 = por %p190_p2, %p189_p0  ;;  %p3918_p6 = por %p196_p4, %p195_p3 }
   0xa   : > { %p3372_p7 = scmp.ge.s32.totalorder %s3831_s27, 1  ;;  %p240_p8 = scmp.lt.s32.totalorder %s3831_s27, 3 }
   0xc   : > { %p241_p9 = pnand %p3372_p7, %p240_p8 }
   0xe   : > { %244 = sbr.rel (%p241_p9) target bundleno = 1058 (0x422), region = 48 }
  0x13   : > { %v309_v0 = vld [vmem:[%s5522_s1] sm:$0xf]  ;;  %vm407_vm0 = vcmask 1043456   ;;  %p272_p10 = scmp.lt.s32.totalorder %s3897_s28, 1  ;;  %vm310_vm1 = vcmask 31744   ;;  %v3833_v23 = vmov 0.0  }
  0x14   : > { %3376 = vmatpush.msk.msra.mxu0 %vm407_vm0, %v309_v0  ;;  %3721 = vmatpush.msk.msra.mxu2 %vm407_vm0, %v309_v0  ;;  %628 = vst.msk [vmem:[#allocation2] sm:$0xff] %vm310_vm1, %v3833_v23  ;;  %v3409_v26 = vld [vmem:[%s5525_s4 + $0x4] sm:$0xf]  ;;  %v748_v30 = vld [vmem:[%s5525_s4] sm:$0xf]  ;;  %vm630_vm2 = vcmask 25600  }
  0x15   : > { %s273_s15 = scalar_select %p272_p10, %s3897_s28, 1  ;;  %629 = vst.msk [vmem:[#allocation2 + $0x8] sm:$0xff] %vm310_vm1, %v3833_v23  ;;  %3410 = vmatpush.msk.msra.mxu1 %vm407_vm0, %v3409_v26  ;;  %3722 = vmatpush.msk.msra.mxu3 %vm407_vm0, %v3409_v26  ;;  %v3510_v33 = vld [vmem:[%s5525_s4 + $0xc] sm:$0xf]  ;;  %v4093_v38 = vld [vmem:[%s5523_s2] ss:$0 sm:$0xff] }
  0x16   : > { %632 = vst.msk [vmem:[#allocation2 + $0x18] sm:$0xff] %vm310_vm1, %v3833_v23  ;;  %3443 = vmatpush.msk.msrb.mxu2 %vm407_vm0, %v748_v30  ;;  %3511 = vmatpush.msk.msrb.mxu0 %vm407_vm0, %v3510_v33  ;;  %v4102_v39 = vld [vmem:[%s5524_s3] ss:$0 sm:$0xff]  ;;  %vm3258_vm3 = vcmask 261120   ;;  %s3720_s21 = sshll.u32 %s3897_s28, 8  ;;  %s3789_s18 = scalar_lea.hbm %s5528_s7, 512 }
  0x17   : > { %s3719_s16 = sshll.u32 %s273_s15, 8  ;;  %633 = vst.msk [vmem:[#allocation2 + $0x20] sm:$0xff] %vm310_vm1, %v3833_v23  ;;  %s3303_s29 = scalar_lea.hbm %s5528_s7, %s3720_s21 }
  0x18   : > { %s3934_s19 = scalar_lea.vmem %s5521_s0, %s3719_s16  ;;  %635 = vst.msk [vmem:[#allocation2 + $0x30] sm:$0xff] %vm310_vm1, %v3833_v23  ;;  %s269_s16 = sand.u32 1, %s3823_s25  }
  0x19   : > { %v277_v1 = vld [vmem:[%s3934_s19] sm:$0xff]  ;;  %v278_v3 = vld [vmem:[%s3934_s19 + $0x8] sm:$0xff]  ;;  %v279_v5 = vld [vmem:[%s3934_s19 + $0x10] sm:$0xff]  ;;  %636 = vst.msk [vmem:[#allocation2 + $0x38] sm:$0xff] %vm310_vm1, %v3833_v23  ;;  %s3306_s9 = sshll.u32 %s3303_s29, 4  ;;  %s3292_s28 = scalar_lea.sflag [#allocation4], %s269_s16  ;;  %s3307_s9 = int_to_ptr.hbm [resolvable:$true] %s3306_s9 }
  0x1a   : > { %v293_v2 = vld [vmem:[%s3934_s19 + $0x80] sm:$0xff]  ;;  %3377 = vmatmul.msk.f32.vlgmr.msra.gmra.mxu0 %vm310_vm1, %v277_v1  ;;  %v294_v4 = vld [vmem:[%s3934_s19 + $0x88] sm:$0xff]  ;;  %v295_v6 = vld [vmem:[%s3934_s19 + $0x90] sm:$0xff]  ;;  %638 = vst.msk [vmem:[#allocation2 + $0x48] sm:$0xff] %vm310_vm1, %v3833_v23  ;;  %s3783_s13 = sshra.s32 %s3307_s9, 4  ;;  %s3784_s13 = int_to_ptr.hbm [resolvable:$true] %s3783_s13 }
  0x1b   : > { %3393 = vmatmul.msk.f32.vlgmr.msra.gmra.mxu2 %vm310_vm1, %v293_v2  ;;  %v280_v7 = vld [vmem:[%s3934_s19 + $0x18] sm:$0xff]  ;;  %v281_v9 = vld [vmem:[%s3934_s19 + $0x20] sm:$0xff]  ;;  %v282_v11 = vld [vmem:[%s3934_s19 + $0x28] sm:$0xff]  ;;  %639 = vst.msk [vmem:[#allocation2 + $0x50] sm:$0xff] %vm310_vm1, %v3833_v23  ;;  %s3785_s14 = scalar_lea.hbm %s3784_s13, 256  ;;  %p3790_p0 = scmp.lt.s32.totalorder %s3784_s13, %s5528_s7 }
  0x1c   : > { %v296_v8 = vld [vmem:[%s3934_s19 + $0x98] sm:$0xff]  ;;  %v297_v10 = vld [vmem:[%s3934_s19 + $0xa0] sm:$0xff]  ;;  %v298_v12 = vld [vmem:[%s3934_s19 + $0xa8] sm:$0xff]  ;;  %641 = vst.msk [vmem:[#allocation2 + $0x60] sm:$0xff] %vm310_vm1, %v3833_v23  ;;  %p3786_p11 = scmp.ne.s32.totalorder %s3784_s13, %s3785_s14  ;;  %p3791_p1 = scmp.lt.s32.totalorder %s3789_s18, %s3785_s14 }
  0x1d   : > { %v283_v13 = vld [vmem:[%s3934_s19 + $0x30] sm:$0xff]  ;;  %v284_v15 = vld [vmem:[%s3934_s19 + $0x38] sm:$0xff]  ;;  %v285_v17 = vld [vmem:[%s3934_s19 + $0x40] sm:$0xff]  ;;  %642 = vst.msk [vmem:[#allocation2 + $0x68] sm:$0xff] %vm310_vm1, %v3833_v23 }
  0x1e   : > { %v299_v14 = vld [vmem:[%s3934_s19 + $0xb0] sm:$0xff]  ;;  %v300_v16 = vld [vmem:[%s3934_s19 + $0xb8] sm:$0xff]  ;;  %v301_v18 = vld [vmem:[%s3934_s19 + $0xc0] sm:$0xff]  ;;  %644 = vst.msk [vmem:[#allocation2 + $0x78] sm:$0xff] %vm310_vm1, %v3833_v23  ;;  %p3787_p12 = pnand %p3786_p11, %p3914_p5  ;;  %p3792_p2 = por %p3791_p1, %p3790_p0 }
  0x1f   : > { %v286_v19 = vld [vmem:[%s3934_s19 + $0x48] sm:$0xff]  ;;  %v287_v21 = vld [vmem:[%s3934_s19 + $0x50] sm:$0xff]  ;;  %v288_v24 = vld [vmem:[%s3934_s19 + $0x58] sm:$0xff]  ;;  %645 = vst.msk [vmem:[#allocation2 + $0x80] sm:$0xff] %vm310_vm1, %v3833_v23 }
  0x20   : > { %v302_v20 = vld [vmem:[%s3934_s19 + $0xc8] sm:$0xff]  ;;  %v303_v22 = vld [vmem:[%s3934_s19 + $0xd0] sm:$0xff]  ;;  %v304_v25 = vld [vmem:[%s3934_s19 + $0xd8] sm:$0xff]  ;;  %647 = vst.msk [vmem:[#allocation2 + $0x90] sm:$0xff] %vm310_vm1, %v3833_v23  ;;  %p3788_p13 = pneg %p3787_p12 }
  0x21   : > { %v749_v27 = vld [vmem:[#allocation2 + $0x1] sm:$0xff]  ;;  %648 = vst.msk [vmem:[#allocation2 + $0x98] sm:$0xff] %vm310_vm1, %v3833_v23  ;;  %v291_v34 = vld [vmem:[%s3934_s19 + $0x70] sm:$0xff]  ;;  %v292_v36 = vld [vmem:[%s3934_s19 + $0x78] sm:$0xff] }
  0x22   : > { %3378 = vmatmul.msk.f32.gmra.mxu0 %vm310_vm1, %v278_v3  ;;  %v289_v28 = vld [vmem:[%s3934_s19 + $0x60] sm:$0xff]  ;;  %3411 = vmatmul.msk.f32.vlgmr.msra.gmra.mxu1 %vm310_vm1, %v749_v27  ;;  %650 = vst.msk [vmem:[#allocation2 + $0xa8] sm:$0xff] %vm310_vm1, %v3833_v23  ;;  %v290_v31 = vld [vmem:[%s3934_s19 + $0x68] sm:$0xff]  ;;  %v307_v35 = vld [vmem:[%s3934_s19 + $0xf0] sm:$0xff]  ;;  %p3793_p3 = pnand %p3792_p2, %p3788_p13 }
  0x23   : > { %3394 = vmatmul.msk.f32.gmra.mxu2 %vm310_vm1, %v294_v4  ;;  %v305_v29 = vld [vmem:[%s3934_s19 + $0xe0] sm:$0xff]  ;;  %651 = vst.msk [vmem:[#allocation2 + $0xb0] sm:$0xff] %vm310_vm1, %v3833_v23  ;;  %v306_v32 = vld [vmem:[%s3934_s19 + $0xe8] sm:$0xff]  ;;  %v308_v37 = vld [vmem:[%s3934_s19 + $0xf8] sm:$0xff]  ;;  %s3373_s19 = sshll.u32 %s269_s16, 8 }
  0x24   : > { %653 = vst.msk [vmem:[#allocation2 + $0xc0] sm:$0xff] %vm310_vm1, %v3833_v23  ;;  %v716_v41 = vld [vmem:[#allocation2] sm:$0xff]  ;;  %v717_v49 = vld [vmem:[#allocation2 + $0x8] sm:$0xff]  ;;  %s5178_s20 = scalar_lea.vmem [#allocation3], %s3373_s19 }
  0x25   : > { %654 = vst.msk [vmem:[#allocation2 + $0xc8] sm:$0xff] %vm310_vm1, %v3833_v23  ;;  %s3304_s8 = sshll.u32 %s5178_s20, 4  ;;  %s3305_s8 = int_to_ptr.vmem [resolvable:$true] %s3304_s8 }
  0x26   : > { %656 = vst.msk [vmem:[#allocation2 + $0xd8] sm:$0xff] %vm310_vm1, %v3833_v23 }
  0x27   : > { %657 = vst.msk [vmem:[#allocation2 + $0xe0] sm:$0xff] %vm310_vm1, %v3833_v23 }
  0x28   : > { %659 = vst.msk [vmem:[#allocation2 + $0xf0] sm:$0xff] %vm310_vm1, %v3833_v23 }
  0x29   : > { %660 = vst.msk [vmem:[#allocation2 + $0xf8] sm:$0xff] %vm310_vm1, %v3833_v23 }
  0x2a   : > { %3379 = vmatmul.msk.f32.gmra.mxu0 %vm310_vm1, %v279_v5  ;;  %662 = vst.msk [vmem:[#allocation2 + $0x108] sm:$0xff] %vm310_vm1, %v3833_v23 }
  0x2b   : > { %3395 = vmatmul.msk.f32.gmra.mxu2 %vm310_vm1, %v295_v6  ;;  %663 = vst.msk [vmem:[#allocation2 + $0x110] sm:$0xff] %vm310_vm1, %v3833_v23 }
  0x2c   : > { %665 = vst.msk [vmem:[#allocation2 + $0x120] sm:$0xff] %vm310_vm1, %v3833_v23 }
  0x2d   : > { %666 = vst.msk [vmem:[#allocation2 + $0x128] sm:$0xff] %vm310_vm1, %v3833_v23 }
  0x2e   : > { %668 = vst.msk [vmem:[#allocation2 + $0x138] sm:$0xff] %vm310_vm1, %v3833_v23 }
  0x2f   : > { %669 = vst.msk [vmem:[#allocation2 + $0x140] sm:$0xff] %vm310_vm1, %v3833_v23 }
  0x30   : > { %671 = vst.msk [vmem:[#allocation2 + $0x150] sm:$0xff] %vm310_vm1, %v3833_v23 }
  0x31   : > { %672 = vst.msk [vmem:[#allocation2 + $0x158] sm:$0xff] %vm310_vm1, %v3833_v23 }
  0x32   : > { %3380 = vmatmul.msk.f32.gmra.mxu0 %vm310_vm1, %v280_v7  ;;  %674 = vst.msk [vmem:[#allocation2 + $0x168] sm:$0xff] %vm310_vm1, %v3833_v23 }
  0x33   : > { %3396 = vmatmul.msk.f32.gmra.mxu2 %vm310_vm1, %v296_v8  ;;  %675 = vst.msk [vmem:[#allocation2 + $0x170] sm:$0xff] %vm310_vm1, %v3833_v23 }
  0x34   : > { %677 = vst.msk [vmem:[#allocation2 + $0x180] sm:$0xff] %vm310_vm1, %v3833_v23 }
  0x35   : > { %678 = vst.msk [vmem:[#allocation2 + $0x188] sm:$0xff] %vm310_vm1, %v3833_v23 }
  0x36   : > { %680 = vst.msk [vmem:[#allocation2 + $0x198] sm:$0xff] %vm310_vm1, %v3833_v23 }
  0x37   : > { %681 = vst.msk [vmem:[#allocation2 + $0x1a0] sm:$0xff] %vm310_vm1, %v3833_v23 }
  0x38   : > { %631 = vst.msk [vmem:[#allocation2 + $0x10] sm:$0x3] %vm630_vm2, %v3833_v23 }
  0x39   : > { %634 = vst.msk [vmem:[#allocation2 + $0x28] sm:$0x3] %vm630_vm2, %v3833_v23 }
  0x3a   : > { %3381 = vmatmul.msk.f32.gmra.mxu0 %vm310_vm1, %v281_v9  ;;  %637 = vst.msk [vmem:[#allocation2 + $0x40] sm:$0x3] %vm630_vm2, %v3833_v23 }
  0x3b   : > { %3397 = vmatmul.msk.f32.gmra.mxu2 %vm310_vm1, %v297_v10  ;;  %640 = vst.msk [vmem:[#allocation2 + $0x58] sm:$0x3] %vm630_vm2, %v3833_v23 }
  0x3c   : > { %643 = vst.msk [vmem:[#allocation2 + $0x70] sm:$0x3] %vm630_vm2, %v3833_v23 }
  0x3d   : > { %646 = vst.msk [vmem:[#allocation2 + $0x88] sm:$0x3] %vm630_vm2, %v3833_v23 }
  0x3e   : > { %649 = vst.msk [vmem:[#allocation2 + $0xa0] sm:$0x3] %vm630_vm2, %v3833_v23 }
  0x3f   : > { %v750_v43 = vld [vmem:[#allocation2 + $0x9] sm:$0xff]  ;;  %652 = vst.msk [vmem:[#allocation2 + $0xb8] sm:$0x3] %vm630_vm2, %v3833_v23 }
  0x40   : > { %3412 = vmatmul.msk.f32.gmra.mxu1 %vm310_vm1, %v750_v43  ;;  %655 = vst.msk [vmem:[#allocation2 + $0xd0] sm:$0x3] %vm630_vm2, %v3833_v23 }
  0x41   : > { %658 = vst.msk [vmem:[#allocation2 + $0xe8] sm:$0x3] %vm630_vm2, %v3833_v23 }
  0x42   : > { %3382 = vmatmul.msk.f32.gmra.mxu0 %vm310_vm1, %v282_v11  ;;  %661 = vst.msk [vmem:[#allocation2 + $0x100] sm:$0x3] %vm630_vm2, %v3833_v23 }
  0x43   : > { %3398 = vmatmul.msk.f32.gmra.mxu2 %vm310_vm1, %v298_v12  ;;  %664 = vst.msk [vmem:[#allocation2 + $0x118] sm:$0x3] %vm630_vm2, %v3833_v23 }
  0x44   : > { %667 = vst.msk [vmem:[#allocation2 + $0x130] sm:$0x3] %vm630_vm2, %v3833_v23 }
  0x45   : > { %670 = vst.msk [vmem:[#allocation2 + $0x148] sm:$0x3] %vm630_vm2, %v3833_v23 }
  0x46   : > { %673 = vst.msk [vmem:[#allocation2 + $0x160] sm:$0x3] %vm630_vm2, %v3833_v23 }
  0x47   : > { %676 = vst.msk [vmem:[#allocation2 + $0x178] sm:$0x3] %vm630_vm2, %v3833_v23 }
  0x48   : > { %679 = vst.msk [vmem:[#allocation2 + $0x190] sm:$0x3] %vm630_vm2, %v3833_v23 }
  0x49   : > { %682 = vst.msk [vmem:[#allocation2 + $0x1a8] sm:$0x3] %vm630_vm2, %v3833_v23 }
  0x4a   : > { %3383 = vmatmul.msk.f32.gmra.mxu0 %vm310_vm1, %v283_v13 }
  0x4b   : > { %3399 = vmatmul.msk.f32.gmra.mxu2 %vm310_vm1, %v299_v14 }
  0x52   : > { %3384 = vmatmul.msk.f32.gmra.mxu0 %vm310_vm1, %v284_v15 }
  0x53   : > { %3400 = vmatmul.msk.f32.gmra.mxu2 %vm310_vm1, %v300_v16 }
  0x5a   : > { %3385 = vmatmul.msk.f32.gmra.mxu0 %vm310_vm1, %v285_v17 }
  0x5b   : > { %3401 = vmatmul.msk.f32.gmra.mxu2 %vm310_vm1, %v301_v18 }
  0x62   : > { %3386 = vmatmul.msk.f32.gmra.mxu0 %vm310_vm1, %v286_v19 }
  0x63   : > { %3402 = vmatmul.msk.f32.gmra.mxu2 %vm310_vm1, %v302_v20 }
  0x6a   : > { %3387 = vmatmul.msk.f32.gmra.mxu0 %vm310_vm1, %v287_v21 }
  0x6b   : > { %3403 = vmatmul.msk.f32.gmra.mxu2 %vm310_vm1, %v303_v22 }
  0x72   : > { %3388 = vmatmul.msk.f32.gmra.mxu0 %vm310_vm1, %v288_v24 }
  0x73   : > { %3404 = vmatmul.msk.f32.gmra.mxu2 %vm310_vm1, %v304_v25 }
  0x7a   : > { %3389 = vmatmul.msk.f32.gmra.mxu0 %vm310_vm1, %v289_v28 }
  0x7b   : > { %3405 = vmatmul.msk.f32.gmra.mxu2 %vm310_vm1, %v305_v29 }
  0x82   : > { %3390 = vmatmul.msk.f32.gmra.mxu0 %vm310_vm1, %v290_v31 }
  0x83   : > { %3406 = vmatmul.msk.f32.gmra.mxu2 %vm310_vm1, %v306_v32 }
  0x8a   : > { %3391 = vmatmul.msk.f32.gmra.mxu0 %vm310_vm1, %v291_v34 }
  0x8b   : > { %3407 = vmatmul.msk.f32.gmra.mxu2 %vm310_vm1, %v307_v35 }
  0x92   : > { %3392 = vmatmul.msk.f32.gmra.mxu0 %vm310_vm1, %v292_v36 }
  0x93   : > { %3408 = vmatmul.msk.f32.gmra.mxu2 %vm310_vm1, %v308_v37 }
  0x97   : > { %v428_v40 = vpop.f32.mrf.mxu0 }
  0x98   : > { %v528_v42 = vmul.f32 %v4093_v38, %v428_v40 }
  0x9a   : > { %v564_v44 = vadd.f32 %v4102_v39, %v528_v42 }
  0x9b   : > { %3444 = vmatmul.msk.f32.vlgmr.msrb.gmra.mxu2 %vm310_vm1, %v716_v41 }
  0x9c   : > { %v596_v45 = vmax.f32 %v564_v44, 0.0 }
  0x9e   : > { %v476_v46 = vpop.f32.mrf.mxu2  ;;  %684 = vst.msk [vmem:[#allocation2 + $0x19] sm:$0xff] %vm310_vm1, %v596_v45 }
  0x9f   : > { %v544_v47 = vmul.f32 %v4093_v38, %v476_v46  ;;  %v431_v48 = vpop.f32.mrf.mxu0 }
  0xa0   : > { %v529_v51 = vmul.f32 %v4093_v38, %v431_v48 }
  0xa1   : > { %v580_v50 = vadd.f32 %v4102_v39, %v544_v47 }
  0xa2   : > { %v565_v53 = vadd.f32 %v4102_v39, %v529_v51 }
  0xa3   : > { %v612_v52 = vmax.f32 %v580_v50, 0.0  ;;  %3445 = vmatmul.msk.f32.gmra.mxu2 %vm310_vm1, %v717_v49 }
  0xa4   : > { %v597_v54 = vmax.f32 %v565_v53, 0.0 }
  0xa5   : > { %700 = vst.msk [vmem:[#allocation2 + $0xd9] sm:$0xff] %vm310_vm1, %v612_v52  ;;  %v4143_v56 = vld [vmem:[#allocation2 + $0x19] sm:$0xff] }
  0xa6   : > { %v479_v55 = vpop.f32.mrf.mxu2  ;;  %v1485_v57 = vld [vmem:[#allocation2 + $0x18] sm:$0xff]  ;;  %685 = vst.msk [vmem:[#allocation2 + $0x21] sm:$0xff] %vm310_vm1, %v597_v54  ;;  %3413 = vmatmul.msk.f32.gmra.mxu1 %vm310_vm1, %v4143_v56 }
  0xa7   : > { %v545_v58 = vmul.f32 %v4093_v38, %v479_v55  ;;  %3512 = vmatmul.msk.f32.vlgmr.msrb.gmra.mxu0 %vm310_vm1, %v1485_v57  ;;  %v434_v59 = vpop.f32.mrf.mxu0 }
  0xa8   : > { %v530_v61 = vmul.f32 %v4093_v38, %v434_v59 }
  0xa9   : > { %v581_v60 = vadd.f32 %v4102_v39, %v545_v58 }
  0xaa   : > { %v566_v63 = vadd.f32 %v4102_v39, %v530_v61 }
  0xab   : > { %v613_v62 = vmax.f32 %v581_v60, 0.0  ;;  %3446 = vmatmul.msk.f32.gmra.mxu2 %vm310_vm1, %v1485_v57 }
  0xac   : > { %v598_v0 = vmax.f32 %v566_v63, 0.0 }
  0xad   : > { %701 = vst.msk [vmem:[#allocation2 + $0xe1] sm:$0xff] %vm310_vm1, %v613_v62  ;;  %v4155_v2 = vld [vmem:[#allocation2 + $0x21] sm:$0xff] }
  0xae   : > { %v482_v1 = vpop.f32.mrf.mxu2  ;;  %v1486_v3 = vld [vmem:[#allocation2 + $0x20] sm:$0xff]  ;;  %686 = vst.msk [vmem:[#allocation2 + $0x31] sm:$0xff] %vm310_vm1, %v598_v0  ;;  %3414 = vmatmul.msk.f32.gmra.mxu1 %vm310_vm1, %v4155_v2 }
  0xaf   : > { %v546_v4 = vmul.f32 %v4093_v38, %v482_v1  ;;  %3513 = vmatmul.msk.f32.gmra.mxu0 %vm310_vm1, %v1486_v3  ;;  %v437_v5 = vpop.f32.mrf.mxu0 }
  0xb0   : > { %v531_v7 = vmul.f32 %v4093_v38, %v437_v5 }
  0xb1   : > { %v582_v6 = vadd.f32 %v4102_v39, %v546_v4 }
  0xb2   : > { %v567_v9 = vadd.f32 %v4102_v39, %v531_v7 }
  0xb3   : > { %v614_v8 = vmax.f32 %v582_v6, 0.0  ;;  %3447 = vmatmul.msk.f32.gmra.mxu2 %vm310_vm1, %v1486_v3 }
  0xb4   : > { %v599_v10 = vmax.f32 %v567_v9, 0.0 }
  0xb5   : > { %702 = vst.msk [vmem:[#allocation2 + $0xf1] sm:$0xff] %vm310_vm1, %v614_v8  ;;  %v4167_v12 = vld [vmem:[#allocation2 + $0x31] sm:$0xff] }
  0xb6   : > { %v485_v11 = vpop.f32.mrf.mxu2  ;;  %v1487_v13 = vld [vmem:[#allocation2 + $0x30] sm:$0xff]  ;;  %687 = vst.msk [vmem:[#allocation2 + $0x39] sm:$0xff] %vm310_vm1, %v599_v10  ;;  %3415 = vmatmul.msk.f32.gmra.mxu1 %vm310_vm1, %v4167_v12 }
  0xb7   : > { %v547_v14 = vmul.f32 %v4093_v38, %v485_v11  ;;  %3514 = vmatmul.msk.f32.gmra.mxu0 %vm310_vm1, %v1487_v13  ;;  %v440_v15 = vpop.f32.mrf.mxu0 }
  0xb8   : > { %v532_v17 = vmul.f32 %v4093_v38, %v440_v15 }
  0xb9   : > { %v583_v16 = vadd.f32 %v4102_v39, %v547_v14 }
  0xba   : > { %v568_v19 = vadd.f32 %v4102_v39, %v532_v17 }
  0xbb   : > { %v615_v18 = vmax.f32 %v583_v16, 0.0  ;;  %3448 = vmatmul.msk.f32.gmra.mxu2 %vm310_vm1, %v1487_v13 }
  0xbc   : > { %v600_v20 = vmax.f32 %v568_v19, 0.0 }
  0xbd   : > { %703 = vst.msk [vmem:[#allocation2 + $0xf9] sm:$0xff] %vm310_vm1, %v615_v18  ;;  %v4179_v22 = vld [vmem:[#allocation2 + $0x39] sm:$0xff] }
  0xbe   : > { %v488_v21 = vpop.f32.mrf.mxu2  ;;  %v1488_v23 = vld [vmem:[#allocation2 + $0x38] sm:$0xff]  ;;  %688 = vst.msk [vmem:[#allocation2 + $0x49] sm:$0xff] %vm310_vm1, %v600_v20  ;;  %3416 = vmatmul.msk.f32.gmra.mxu1 %vm310_vm1, %v4179_v22 }
  0xbf   : > { %v548_v24 = vmul.f32 %v4093_v38, %v488_v21  ;;  %3515 = vmatmul.msk.f32.gmra.mxu0 %vm310_vm1, %v1488_v23  ;;  %v443_v25 = vpop.f32.mrf.mxu0 }
  0xc0   : > { %v533_v27 = vmul.f32 %v4093_v38, %v443_v25 }
  0xc1   : > { %v584_v26 = vadd.f32 %v4102_v39, %v548_v24 }
  0xc2   : > { %v569_v29 = vadd.f32 %v4102_v39, %v533_v27 }
  0xc3   : > { %v616_v28 = vmax.f32 %v584_v26, 0.0  ;;  %3449 = vmatmul.msk.f32.gmra.mxu2 %vm310_vm1, %v1488_v23 }
  0xc4   : > { %v601_v30 = vmax.f32 %v569_v29, 0.0 }
  0xc5   : > { %704 = vst.msk [vmem:[#allocation2 + $0x109] sm:$0xff] %vm310_vm1, %v616_v28  ;;  %v4191_v32 = vld [vmem:[#allocation2 + $0x49] sm:$0xff] }
  0xc6   : > { %v491_v31 = vpop.f32.mrf.mxu2  ;;  %v1489_v33 = vld [vmem:[#allocation2 + $0x48] sm:$0xff]  ;;  %689 = vst.msk [vmem:[#allocation2 + $0x51] sm:$0xff] %vm310_vm1, %v601_v30  ;;  %3417 = vmatmul.msk.f32.gmra.mxu1 %vm310_vm1, %v4191_v32 }
  0xc7   : > { %v549_v34 = vmul.f32 %v4093_v38, %v491_v31  ;;  %3516 = vmatmul.msk.f32.gmra.mxu0 %vm310_vm1, %v1489_v33  ;;  %v446_v35 = vpop.f32.mrf.mxu0 }
  0xc8   : > { %v534_v37 = vmul.f32 %v4093_v38, %v446_v35 }
  0xc9   : > { %v585_v36 = vadd.f32 %v4102_v39, %v549_v34  ;;  %v3544_v34 = vld [vmem:[%s5525_s4 + $0x10] sm:$0xf] }
  0xca   : > { %v570_v41 = vadd.f32 %v4102_v39, %v534_v37  ;;  %3545 = vmatpush.msk.msrb.mxu1 %vm407_vm0, %v3544_v34 }
  0xcb   : > { %v617_v40 = vmax.f32 %v585_v36, 0.0  ;;  %3450 = vmatmul.msk.f32.gmra.mxu2 %vm310_vm1, %v1489_v33 }
  0xcc   : > { %v602_v42 = vmax.f32 %v570_v41, 0.0 }
  0xcd   : > { %705 = vst.msk [vmem:[#allocation2 + $0x111] sm:$0xff] %vm310_vm1, %v617_v40  ;;  %v4203_v44 = vld [vmem:[#allocation2 + $0x51] sm:$0xff] }
  0xce   : > { %v494_v43 = vpop.f32.mrf.mxu2  ;;  %v1490_v45 = vld [vmem:[#allocation2 + $0x50] sm:$0xff]  ;;  %690 = vst.msk [vmem:[#allocation2 + $0x61] sm:$0xff] %vm310_vm1, %v602_v42  ;;  %3418 = vmatmul.msk.f32.gmra.mxu1 %vm310_vm1, %v4203_v44 }
  0xcf   : > { %v550_v46 = vmul.f32 %v4093_v38, %v494_v43  ;;  %3517 = vmatmul.msk.f32.gmra.mxu0 %vm310_vm1, %v1490_v45  ;;  %v449_v47 = vpop.f32.mrf.mxu0 }
  0xd0   : > { %v535_v49 = vmul.f32 %v4093_v38, %v449_v47 }
  0xd1   : > { %v586_v48 = vadd.f32 %v4102_v39, %v550_v46 }
  0xd2   : > { %v571_v51 = vadd.f32 %v4102_v39, %v535_v49 }
  0xd3   : > { %v618_v50 = vmax.f32 %v586_v48, 0.0  ;;  %3451 = vmatmul.msk.f32.gmra.mxu2 %vm310_vm1, %v1490_v45  ;;  %v3476_v48 = vld [vmem:[%s5525_s4 + $0x8] sm:$0xf] }
  0xd4   : > { %v603_v52 = vmax.f32 %v571_v51, 0.0  ;;  %3477 = vmatpush.msk.msrb.mxu3 %vm407_vm0, %v3476_v48 }
  0xd5   : > { %706 = vst.msk [vmem:[#allocation2 + $0x121] sm:$0xff] %vm310_vm1, %v618_v50  ;;  %v4215_v54 = vld [vmem:[#allocation2 + $0x61] sm:$0xff] }
  0xd6   : > { %v497_v53 = vpop.f32.mrf.mxu2  ;;  %v1491_v55 = vld [vmem:[#allocation2 + $0x60] sm:$0xff]  ;;  %691 = vst.msk [vmem:[#allocation2 + $0x69] sm:$0xff] %vm310_vm1, %v603_v52  ;;  %3419 = vmatmul.msk.f32.gmra.mxu1 %vm310_vm1, %v4215_v54 }
  0xd7   : > { %v551_v57 = vmul.f32 %v4093_v38, %v497_v53  ;;  %3518 = vmatmul.msk.f32.gmra.mxu0 %vm310_vm1, %v1491_v55  ;;  %v452_v58 = vpop.f32.mrf.mxu0 }
  0xd8   : > { %v536_v60 = vmul.f32 %v4093_v38, %v452_v58 }
  0xd9   : > { %v587_v59 = vadd.f32 %v4102_v39, %v551_v57 }
  0xda   : > { %v572_v62 = vadd.f32 %v4102_v39, %v536_v60 }
  0xdb   : > { %v619_v61 = vmax.f32 %v587_v59, 0.0  ;;  %3452 = vmatmul.msk.f32.gmra.mxu2 %vm310_vm1, %v1491_v55 }
  0xdc   : > { %v604_v63 = vmax.f32 %v572_v62, 0.0 }
  0xdd   : > { %707 = vst.msk [vmem:[#allocation2 + $0x129] sm:$0xff] %vm310_vm1, %v619_v61  ;;  %v4227_v1 = vld [vmem:[#allocation2 + $0x69] sm:$0xff] }
  0xde   : > { %v500_v0 = vpop.f32.mrf.mxu2  ;;  %v1492_v3 = vld [vmem:[#allocation2 + $0x68] sm:$0xff]  ;;  %692 = vst.msk [vmem:[#allocation2 + $0x79] sm:$0xff] %vm310_vm1, %v604_v63  ;;  %3420 = vmatmul.msk.f32.gmra.mxu1 %vm310_vm1, %v4227_v1 }
  0xdf   : > { %v552_v4 = vmul.f32 %v4093_v38, %v500_v0  ;;  %3519 = vmatmul.msk.f32.gmra.mxu0 %vm310_vm1, %v1492_v3  ;;  %v455_v5 = vpop.f32.mrf.mxu0 }
  0xe0   : > { %v537_v7 = vmul.f32 %v4093_v38, %v455_v5 }
  0xe1   : > { %v588_v6 = vadd.f32 %v4102_v39, %v552_v4 }
  0xe2   : > { %v573_v9 = vadd.f32 %v4102_v39, %v537_v7 }
  0xe3   : > { %v620_v8 = vmax.f32 %v588_v6, 0.0  ;;  %3453 = vmatmul.msk.f32.gmra.mxu2 %vm310_vm1, %v1492_v3 }
  0xe4   : > { %v605_v10 = vmax.f32 %v573_v9, 0.0 }
  0xe5   : > { %708 = vst.msk [vmem:[#allocation2 + $0x139] sm:$0xff] %vm310_vm1, %v620_v8  ;;  %v4239_v13 = vld [vmem:[#allocation2 + $0x79] sm:$0xff] }
  0xe6   : > { %v503_v11 = vpop.f32.mrf.mxu2  ;;  %v1493_v14 = vld [vmem:[#allocation2 + $0x78] sm:$0xff]  ;;  %693 = vst.msk [vmem:[#allocation2 + $0x81] sm:$0xff] %vm310_vm1, %v605_v10  ;;  %3421 = vmatmul.msk.f32.gmra.mxu1 %vm310_vm1, %v4239_v13 }
  0xe7   : > { %v553_v15 = vmul.f32 %v4093_v38, %v503_v11  ;;  %3520 = vmatmul.msk.f32.gmra.mxu0 %vm310_vm1, %v1493_v14  ;;  %v458_v16 = vpop.f32.mrf.mxu0 }
  0xe8   : > { %v538_v18 = vmul.f32 %v4093_v38, %v458_v16  ;;  %v899_v16 = vpop.f32.mrf.mxu1 }
  0xe9   : > { %v589_v17 = vadd.f32 %v4102_v39, %v553_v15 }
  0xea   : > { %v574_v20 = vadd.f32 %v4102_v39, %v538_v18 }
  0xeb   : > { %v621_v19 = vmax.f32 %v589_v17, 0.0  ;;  %3454 = vmatmul.msk.f32.gmra.mxu2 %vm310_vm1, %v1493_v14 }
  0xec   : > { %v606_v21 = vmax.f32 %v574_v20, 0.0 }
  0xed   : > { %709 = vst.msk [vmem:[#allocation2 + $0x141] sm:$0xff] %vm310_vm1, %v621_v19  ;;  %v4251_v24 = vld [vmem:[#allocation2 + $0x81] sm:$0xff] }
  0xee   : > { %v506_v23 = vpop.f32.mrf.mxu2  ;;  %v1494_v25 = vld [vmem:[#allocation2 + $0x80] sm:$0xff]  ;;  %694 = vst.msk [vmem:[#allocation2 + $0x91] sm:$0xff] %vm310_vm1, %v606_v21  ;;  %3422 = vmatmul.msk.f32.gmra.mxu1 %vm310_vm1, %v4251_v24 }
  0xef   : > { %v554_v26 = vmul.f32 %v4093_v38, %v506_v23  ;;  %3521 = vmatmul.msk.f32.gmra.mxu0 %vm310_vm1, %v1494_v25  ;;  %v461_v27 = vpop.f32.mrf.mxu0 }
  0xf0   : > { %v539_v29 = vmul.f32 %v4093_v38, %v461_v27 }
  0xf1   : > { %v590_v28 = vadd.f32 %v4102_v39, %v554_v26 }
  0xf2   : > { %v575_v31 = vadd.f32 %v4102_v39, %v539_v29  ;;  %v902_v29 = vpop.f32.mrf.mxu1 }
  0xf3   : > { %v622_v30 = vmax.f32 %v590_v28, 0.0  ;;  %3455 = vmatmul.msk.f32.gmra.mxu2 %vm310_vm1, %v1494_v25 }
  0xf4   : > { %v607_v33 = vmax.f32 %v575_v31, 0.0 }
  0xf5   : > { %710 = vst.msk [vmem:[#allocation2 + $0x151] sm:$0xff] %vm310_vm1, %v622_v30  ;;  %v4266_v36 = vld [vmem:[#allocation2 + $0x91] sm:$0xff] }
  0xf6   : > { %v509_v35 = vpop.f32.mrf.mxu2  ;;  %v1495_v37 = vld [vmem:[#allocation2 + $0x90] sm:$0xff]  ;;  %695 = vst.msk [vmem:[#allocation2 + $0x99] sm:$0xff] %vm310_vm1, %v607_v33  ;;  %3423 = vmatmul.msk.f32.gmra.mxu1 %vm310_vm1, %v4266_v36 }
  0xf7   : > { %v555_v40 = vmul.f32 %v4093_v38, %v509_v35  ;;  %3522 = vmatmul.msk.f32.gmra.mxu0 %vm310_vm1, %v1495_v37  ;;  %v464_v41 = vpop.f32.mrf.mxu0  ;;  %v4343_v35 = vld [vmem:[#allocation2 + $0xd9] sm:$0xff] }
  0xf8   : > { %v540_v43 = vmul.f32 %v4093_v38, %v464_v41 }
  0xf9   : > { %v591_v42 = vadd.f32 %v4102_v39, %v555_v40 }
  0xfa   : > { %v576_v46 = vadd.f32 %v4102_v39, %v540_v43  ;;  %v4355_v43 = vld [vmem:[#allocation2 + $0xe1] sm:$0xff] }
  0xfb   : > { %v623_v45 = vmax.f32 %v591_v42, 0.0  ;;  %3456 = vmatmul.msk.f32.gmra.mxu2 %vm310_vm1, %v1495_v37  ;;  %v1501_v37 = vld [vmem:[#allocation2 + $0xd8] sm:$0xff] }
  0xfc   : > { %v608_v47 = vmax.f32 %v576_v46, 0.0  ;;  %v1502_v46 = vld [vmem:[#allocation2 + $0xe0] sm:$0xff] }
  0xfd   : > { %711 = vst.msk [vmem:[#allocation2 + $0x159] sm:$0xff] %vm310_vm1, %v623_v45  ;;  %v4282_v50 = vld [vmem:[#allocation2 + $0x99] sm:$0xff] }
  0xfe   : > { %v512_v49 = vpop.f32.mrf.mxu2  ;;  %v1496_v51 = vld [vmem:[#allocation2 + $0x98] sm:$0xff]  ;;  %696 = vst.msk [vmem:[#allocation2 + $0xa9] sm:$0xff] %vm310_vm1, %v608_v47  ;;  %3424 = vmatmul.msk.f32.gmra.mxu1 %vm310_vm1, %v4282_v50 }
  0xff   : > { %v556_v52 = vmul.f32 %v4093_v38, %v512_v49  ;;  %3523 = vmatmul.msk.f32.gmra.mxu0 %vm310_vm1, %v1496_v51  ;;  %v467_v53 = vpop.f32.mrf.mxu0 }
 0x100   : > { %v541_v57 = vmul.f32 %v4093_v38, %v467_v53 }
 0x101   : > { %v592_v55 = vadd.f32 %v4102_v39, %v556_v52  ;;  %v1503_v52 = vld [vmem:[#allocation2 + $0xf0] sm:$0xff] }
 0x102   : > { %v577_v59 = vadd.f32 %v4102_v39, %v541_v57 }
 0x103   : > { %v624_v58 = vmax.f32 %v592_v55, 0.0  ;;  %3457 = vmatmul.msk.f32.gmra.mxu2 %vm310_vm1, %v1496_v51  ;;  %v4367_v51 = vld [vmem:[#allocation2 + $0xf1] sm:$0xff] }
 0x104   : > { %v609_v60 = vmax.f32 %v577_v59, 0.0  ;;  %v4379_v59 = vld [vmem:[#allocation2 + $0xf9] sm:$0xff] }
 0x105   : > { %712 = vst.msk [vmem:[#allocation2 + $0x169] sm:$0xff] %vm310_vm1, %v624_v58  ;;  %v4295_v62 = vld [vmem:[#allocation2 + $0xa9] sm:$0xff] }
 0x106   : > { %v515_v61 = vpop.f32.mrf.mxu2  ;;  %v1497_v63 = vld [vmem:[#allocation2 + $0xa8] sm:$0xff]  ;;  %697 = vst.msk [vmem:[#allocation2 + $0xb1] sm:$0xff] %vm310_vm1, %v609_v60  ;;  %3425 = vmatmul.msk.f32.gmra.mxu1 %vm310_vm1, %v4295_v62 }
 0x107   : > { %v557_v0 = vmul.f32 %v4093_v38, %v515_v61  ;;  %3524 = vmatmul.msk.f32.gmra.mxu0 %vm310_vm1, %v1497_v63  ;;  %v470_v3 = vpop.f32.mrf.mxu0  ;;  %v1504_v61 = vld [vmem:[#allocation2 + $0xf8] sm:$0xff] }
 0x108   : > { %v542_v5 = vmul.f32 %v4093_v38, %v470_v3  ;;  %v4389_v3 = vld [vmem:[#allocation2 + $0x109] sm:$0xff] }
 0x109   : > { %v593_v4 = vadd.f32 %v4102_v39, %v557_v0 }
 0x10a   : > { %v578_v7 = vadd.f32 %v4102_v39, %v542_v5 }
 0x10b   : > { %v625_v6 = vmax.f32 %v593_v4, 0.0  ;;  %3458 = vmatmul.msk.f32.gmra.mxu2 %vm310_vm1, %v1497_v63  ;;  %v1505_v4 = vld [vmem:[#allocation2 + $0x108] sm:$0xff] }
 0x10c   : > { %v610_v8 = vmax.f32 %v578_v7, 0.0 }
 0x10d   : > { %713 = vst.msk [vmem:[#allocation2 + $0x171] sm:$0xff] %vm310_vm1, %v625_v6  ;;  %v4307_v10 = vld [vmem:[#allocation2 + $0xb1] sm:$0xff] }
 0x10e   : > { %v518_v9 = vpop.f32.mrf.mxu2  ;;  %v1498_v11 = vld [vmem:[#allocation2 + $0xb0] sm:$0xff]  ;;  %698 = vst.msk [vmem:[#allocation2 + $0xc1] sm:$0xff] %vm310_vm1, %v610_v8  ;;  %3426 = vmatmul.msk.f32.gmra.mxu1 %vm310_vm1, %v4307_v10 }
 0x10f   : > { %v558_v14 = vmul.f32 %v4093_v38, %v518_v9  ;;  %3525 = vmatmul.msk.f32.gmra.mxu0 %vm310_vm1, %v1498_v11  ;;  %v473_v15 = vpop.f32.mrf.mxu0  ;;  %v4401_v9 = vld [vmem:[#allocation2 + $0x111] sm:$0xff] }
 0x110   : > { %v543_v18 = vmul.f32 %v4093_v38, %v473_v15 }
 0x111   : > { %v594_v17 = vadd.f32 %v4102_v39, %v558_v14  ;;  %v1506_v14 = vld [vmem:[#allocation2 + $0x110] sm:$0xff] }
 0x112   : > { %v579_v20 = vadd.f32 %v4102_v39, %v543_v18  ;;  %v4413_v18 = vld [vmem:[#allocation2 + $0x121] sm:$0xff] }
 0x113   : > { %v626_v19 = vmax.f32 %v594_v17, 0.0  ;;  %3459 = vmatmul.msk.f32.gmra.mxu2 %vm310_vm1, %v1498_v11 }
 0x114   : > { %v611_v21 = vmax.f32 %v579_v20, 0.0 }
 0x115   : > { %714 = vst.msk [vmem:[#allocation2 + $0x181] sm:$0xff] %vm310_vm1, %v626_v19  ;;  %v4319_v25 = vld [vmem:[#allocation2 + $0xc1] sm:$0xff] }
 0x116   : > { %v521_v23 = vpop.f32.mrf.mxu2  ;;  %v1499_v26 = vld [vmem:[#allocation2 + $0xc0] sm:$0xff]  ;;  %699 = vst.msk [vmem:[#allocation2 + $0xc9] sm:$0xff] %vm310_vm1, %v611_v21  ;;  %3427 = vmatmul.msk.f32.vlgmr.msra.gmra.mxu3 %vm310_vm1, %v4319_v25  ;;  %3546 = vmatmul.msk.f32.vlgmr.msrb.gmra.mxu1 %vm310_vm1, %v4143_v56 }
 0x117   : > { %v559_v27 = vmul.f32 %v4093_v38, %v521_v23  ;;  %3526 = vmatmul.msk.f32.gmra.mxu0 %vm310_vm1, %v1499_v26  ;;  %v1507_v19 = vld [vmem:[#allocation2 + $0x120] sm:$0xff] }
 0x119   : > { %v595_v28 = vadd.f32 %v4102_v39, %v559_v27  ;;  %v4425_v27 = vld [vmem:[#allocation2 + $0x129] sm:$0xff] }
 0x11b   : > { %v627_v30 = vmax.f32 %v595_v28, 0.0  ;;  %3460 = vmatmul.msk.f32.gmra.mxu2 %vm310_vm1, %v1499_v26 }
 0x11d   : > { %715 = vst.msk [vmem:[#allocation2 + $0x189] sm:$0xff] %vm310_vm1, %v627_v30  ;;  %v4331_v33 = vld [vmem:[#allocation2 + $0xc9] sm:$0xff] }
 0x11e   : > { %v1111_v31 = vpop.f32.mrf.mxu2  ;;  %v1500_v38 = vld [vmem:[#allocation2 + $0xc8] sm:$0xff]  ;;  %3428 = vmatmul.msk.f32.gmra.mxu3 %vm310_vm1, %v4331_v33  ;;  %3547 = vmatmul.msk.f32.gmra.mxu1 %vm310_vm1, %v4155_v2 }
 0x11f   : > { %v4333_v34 = vadd.f32 %v1111_v31, %v899_v16  ;;  %3527 = vmatmul.msk.f32.gmra.mxu0 %vm310_vm1, %v1500_v38 }
 0x123   : > { %3461 = vmatmul.msk.f32.gmra.mxu2 %vm310_vm1, %v1500_v38  ;;  %v905_v39 = vpop.f32.mrf.mxu1 }
 0x124   : > { %v4341_v56 = vpop.f32.mrf.mxu0 }
 0x126   : > { %v1114_v40 = vpop.f32.mrf.mxu2  ;;  %3429 = vmatmul.msk.f32.gmra.mxu3 %vm310_vm1, %v4343_v35  ;;  %3548 = vmatmul.msk.f32.gmra.mxu1 %vm310_vm1, %v4167_v12 }
 0x127   : > { %v4345_v41 = vadd.f32 %v1114_v40, %v902_v29  ;;  %3528 = vmatmul.msk.f32.gmra.mxu0 %vm310_vm1, %v1501_v37  ;;  %v1508_v29 = vld [vmem:[#allocation2 + $0x128] sm:$0xff] }
 0x12b   : > { %3462 = vmatmul.msk.f32.gmra.mxu2 %vm310_vm1, %v1501_v37  ;;  %v908_v2 = vpop.f32.mrf.mxu1  ;;  %v1509_v37 = vld [vmem:[#allocation2 + $0x138] sm:$0xff] }
 0x12c   : > { %v4353_v42 = vpop.f32.mrf.mxu0 }
 0x12e   : > { %v1117_v45 = vpop.f32.mrf.mxu2  ;;  %3430 = vmatmul.msk.f32.gmra.mxu3 %vm310_vm1, %v4355_v43  ;;  %3549 = vmatmul.msk.f32.gmra.mxu1 %vm310_vm1, %v4179_v22 }
 0x12f   : > { %v4357_v47 = vadd.f32 %v1117_v45, %v905_v39  ;;  %3529 = vmatmul.msk.f32.gmra.mxu0 %vm310_vm1, %v1502_v46  ;;  %v4437_v39 = vld [vmem:[#allocation2 + $0x139] sm:$0xff] }
 0x133   : > { %3463 = vmatmul.msk.f32.gmra.mxu2 %vm310_vm1, %v1502_v46  ;;  %v911_v48 = vpop.f32.mrf.mxu1  ;;  %v4447_v46 = vld [vmem:[#allocation2 + $0x141] sm:$0xff] }
 0x134   : > { %v4365_v49 = vpop.f32.mrf.mxu0 }
 0x136   : > { %v1120_v53 = vpop.f32.mrf.mxu2  ;;  %3431 = vmatmul.msk.f32.gmra.mxu3 %vm310_vm1, %v4367_v51  ;;  %3550 = vmatmul.msk.f32.gmra.mxu1 %vm310_vm1, %v4191_v32 }
 0x137   : > { %v4369_v55 = vadd.f32 %v1120_v53, %v908_v2  ;;  %3530 = vmatmul.msk.f32.gmra.mxu0 %vm310_vm1, %v1503_v52  ;;  %v1510_v53 = vld [vmem:[#allocation2 + $0x140] sm:$0xff] }
 0x13b   : > { %3464 = vmatmul.msk.f32.gmra.mxu2 %vm310_vm1, %v1503_v52  ;;  %v914_v57 = vpop.f32.mrf.mxu1 }
 0x13c   : > { %v4377_v58 = vpop.f32.mrf.mxu0 }
 0x13e   : > { %v1123_v60 = vpop.f32.mrf.mxu2  ;;  %3432 = vmatmul.msk.f32.gmra.mxu3 %vm310_vm1, %v4379_v59  ;;  %3551 = vmatmul.msk.f32.gmra.mxu1 %vm310_vm1, %v4203_v44 }
 0x13f   : > { %v4381_v63 = vadd.f32 %v1123_v60, %v911_v48  ;;  %3531 = vmatmul.msk.f32.gmra.mxu0 %vm310_vm1, %v1504_v61 }
 0x143   : > { %3465 = vmatmul.msk.f32.gmra.mxu2 %vm310_vm1, %v1504_v61  ;;  %v917_v0 = vpop.f32.mrf.mxu1  ;;  %v4459_v61 = vld [vmem:[#allocation2 + $0x151] sm:$0xff] }
 0x144   : > { %v4391_v5 = vpop.f32.mrf.mxu0 }
 0x146   : > { %v1126_v6 = vpop.f32.mrf.mxu2  ;;  %3433 = vmatmul.msk.f32.gmra.mxu3 %vm310_vm1, %v4389_v3  ;;  %3552 = vmatmul.msk.f32.gmra.mxu1 %vm310_vm1, %v4215_v54 }
 0x147   : > { %v4393_v7 = vadd.f32 %v1126_v6, %v914_v57  ;;  %3532 = vmatmul.msk.f32.gmra.mxu0 %vm310_vm1, %v1505_v4 }
 0x14b   : > { %3466 = vmatmul.msk.f32.gmra.mxu2 %vm310_vm1, %v1505_v4  ;;  %v920_v8 = vpop.f32.mrf.mxu1  ;;  %v3578_v4 = vld [vmem:[%s5525_s4 + $0x14] sm:$0xf] }
 0x14c   : > { %v4403_v15 = vpop.f32.mrf.mxu0  ;;  %3579 = vmatpush.msk.msra.mxu2 %vm407_vm0, %v3578_v4 }
 0x14e   : > { %v1129_v11 = vpop.f32.mrf.mxu2  ;;  %3434 = vmatmul.msk.f32.gmra.mxu3 %vm310_vm1, %v4401_v9  ;;  %3553 = vmatmul.msk.f32.gmra.mxu1 %vm310_vm1, %v4227_v1 }
 0x14f   : > { %v4405_v16 = vadd.f32 %v1129_v11, %v917_v0  ;;  %3533 = vmatmul.msk.f32.gmra.mxu0 %vm310_vm1, %v1506_v14  ;;  %v1511_v0 = vld [vmem:[#allocation2 + $0x150] sm:$0xff] }
 0x153   : > { %3467 = vmatmul.msk.f32.gmra.mxu2 %vm310_vm1, %v1506_v14  ;;  %v923_v17 = vpop.f32.mrf.mxu1  ;;  %v3612_v14 = vld [vmem:[%s5525_s4 + $0x18] sm:$0xf] }
 0x154   : > { %v4422_v23 = vpop.f32.mrf.mxu0  ;;  %3613 = vmatpush.msk.msra.mxu3 %vm407_vm0, %v3612_v14 }
 0x156   : > { %v1132_v20 = vpop.f32.mrf.mxu2  ;;  %3435 = vmatmul.msk.f32.gmra.mxu3 %vm310_vm1, %v4413_v18  ;;  %3554 = vmatmul.msk.f32.gmra.mxu1 %vm310_vm1, %v4239_v13 }
 0x157   : > { %v4415_v21 = vadd.f32 %v1132_v20, %v920_v8  ;;  %3534 = vmatmul.msk.f32.gmra.mxu0 %vm310_vm1, %v1507_v19 }
 0x15b   : > { %3468 = vmatmul.msk.f32.gmra.mxu2 %vm310_vm1, %v1507_v19  ;;  %v926_v26 = vpop.f32.mrf.mxu1  ;;  %v4479_v19 = vld [vmem:[#allocation2 + $0x159] sm:$0xff] }
 0x15c   : > { %v4434_v31 = vpop.f32.mrf.mxu0 }
 0x15e   : > { %v1135_v28 = vpop.f32.mrf.mxu2  ;;  %3436 = vmatmul.msk.f32.gmra.mxu3 %vm310_vm1, %v4425_v27  ;;  %3555 = vmatmul.msk.f32.gmra.mxu1 %vm310_vm1, %v4251_v24 }
 0x15f   : > { %v4427_v30 = vadd.f32 %v1135_v28, %v923_v17  ;;  %3535 = vmatmul.msk.f32.gmra.mxu0 %vm310_vm1, %v1508_v29 }
 0x163   : > { %3469 = vmatmul.msk.f32.gmra.mxu2 %vm310_vm1, %v1508_v29  ;;  %v929_v38 = vpop.f32.mrf.mxu1  ;;  %v3646_v29 = vld [vmem:[%s5525_s4 + $0x1c] sm:$0xf] }
 0x164   : > { %v4449_v48 = vpop.f32.mrf.mxu0  ;;  %3647 = vmatpush.msk.msra.mxu0 %vm407_vm0, %v3646_v29  ;;  %v1515_v29 = vld [vmem:[#allocation2 + $0x180] sm:$0xff] }
 0x165   : > { %5534 = vst [vmem:[#allocation6_spill] sm:$0xff] %v4449_v48 }
 0x166   : > { %v1138_v40 = vpop.f32.mrf.mxu2  ;;  %3437 = vmatmul.msk.f32.gmra.mxu3 %vm310_vm1, %v4437_v39  ;;  %3556 = vmatmul.msk.f32.gmra.mxu1 %vm310_vm1, %v4266_v36 }
 0x167   : > { %v4439_v2 = vadd.f32 %v1138_v40, %v926_v26  ;;  %3536 = vmatmul.msk.f32.gmra.mxu0 %vm310_vm1, %v1509_v37  ;;  %v1512_v26 = vld [vmem:[#allocation2 + $0x158] sm:$0xff] }
 0x16b   : > { %3470 = vmatmul.msk.f32.gmra.mxu2 %vm310_vm1, %v1509_v37  ;;  %v932_v45 = vpop.f32.mrf.mxu1 }
 0x16c   : > { %v4465_v8 = vpop.f32.mrf.mxu0 }
 0x16d   : > { %5535 = vst [vmem:[#allocation7_spill] sm:$0xff] %v4465_v8 }
 0x16e   : > { %v1141_v52 = vpop.f32.mrf.mxu2  ;;  %3438 = vmatmul.msk.f32.gmra.mxu3 %vm310_vm1, %v4447_v46  ;;  %3557 = vmatmul.msk.f32.gmra.mxu1 %vm310_vm1, %v4282_v50 }
 0x16f   : > { %v4451_v57 = vadd.f32 %v1141_v52, %v929_v38  ;;  %3537 = vmatmul.msk.f32.gmra.mxu0 %vm310_vm1, %v1510_v53  ;;  %v3680_v38 = vld [vmem:[%s5525_s4 + $0x20] sm:$0xf]  ;;  %v1513_v52 = vld [vmem:[#allocation2 + $0x168] sm:$0xff] }
 0x170   : > { %3681 = vmatpush.msk.msra.mxu1 %vm407_vm0, %v3680_v38 }
 0x173   : > { %3471 = vmatmul.msk.f32.gmra.mxu2 %vm310_vm1, %v1510_v53  ;;  %v935_v60 = vpop.f32.mrf.mxu1 }
 0x174   : > { %v4494_v37 = vpop.f32.mrf.mxu0 }
 0x175   : > { %5536 = vst [vmem:[#allocation8_spill] sm:$0xff] %v4494_v37  ;;  %v1516_v37 = vld [vmem:[#allocation2 + $0x188] sm:$0xff] }
 0x176   : > { %v1144_v6 = vpop.f32.mrf.mxu2  ;;  %3439 = vmatmul.msk.f32.gmra.mxu3 %vm310_vm1, %v4459_v61  ;;  %3558 = vmatmul.msk.f32.gmra.mxu1 %vm310_vm1, %v4295_v62 }
 0x177   : > { %v4467_v11 = vadd.f32 %v1144_v6, %v932_v45  ;;  %3538 = vmatmul.msk.f32.gmra.mxu0 %vm310_vm1, %v1511_v0  ;;  %v4499_v45 = vld [vmem:[#allocation2 + $0x169] sm:$0xff]  ;;  %v4511_v6 = vld [vmem:[#allocation2 + $0x171] sm:$0xff] }
 0x178   : > { %5539 = vst [vmem:[#allocation11_spill] sm:$0xff] %v4511_v6 }
 0x17b   : > { %3472 = vmatmul.msk.f32.gmra.mxu2 %vm310_vm1, %v1511_v0  ;;  %v938_v17 = vpop.f32.mrf.mxu1 }
 0x17c   : > { %v4508_v0 = vpop.f32.mrf.mxu0 }
 0x17d   : > { %5538 = vst [vmem:[#allocation10_spill] sm:$0xff] %v4508_v0 }
 0x17e   : > { %v1147_v20 = vpop.f32.mrf.mxu2  ;;  %3440 = vmatmul.msk.f32.gmra.mxu3 %vm310_vm1, %v4479_v19  ;;  %3559 = vmatmul.msk.f32.gmra.mxu1 %vm310_vm1, %v4307_v10 }
 0x17f   : > { %v4481_v28 = vadd.f32 %v1147_v20, %v935_v60  ;;  %3539 = vmatmul.msk.f32.gmra.mxu0 %vm310_vm1, %v1512_v26  ;;  %v1514_v20 = vld [vmem:[#allocation2 + $0x170] sm:$0xff] }
 0x183   : > { %3473 = vmatmul.msk.f32.gmra.mxu2 %vm310_vm1, %v1512_v26  ;;  %v941_v40 = vpop.f32.mrf.mxu1 }
 0x184   : > { %v4521_v38 = vpop.f32.mrf.mxu0 }
 0x185   : > { %5541 = vst [vmem:[#allocation13_spill] sm:$0xff] %v4521_v38 }
 0x186   : > { %v1150_v53 = vpop.f32.mrf.mxu2  ;;  %3441 = vmatmul.msk.f32.gmra.mxu3 %vm310_vm1, %v4499_v45  ;;  %3560 = vmatmul.msk.f32.gmra.mxu1 %vm310_vm1, %v4319_v25 }
 0x187   : > { %v4501_v60 = vadd.f32 %v1150_v53, %v938_v17  ;;  %3540 = vmatmul.msk.f32.gmra.mxu0 %vm310_vm1, %v1513_v52  ;;  %v1207_v17 = vld [vmem:[#allocation2 + $0x2] sm:$0xff] }
 0x189   : > { %5537 = vst [vmem:[#allocation9_spill] sm:$0xff] %v4501_v60 }
 0x18b   : > { %3474 = vmatmul.msk.f32.gmra.mxu2 %vm310_vm1, %v1513_v52  ;;  %v944_v4 = vpop.f32.mrf.mxu1 }
 0x18c   : > { %v4534_v48 = vpop.f32.mrf.mxu0 }
 0x18d   : > { %5543 = vst [vmem:[#allocation15_spill] sm:$0xff] %v4534_v48 }
 0x18e   : > { %v1153_v14 = vpop.f32.mrf.mxu2  ;;  %3442 = vmatmul.msk.f32.gmra.mxu3 %vm310_vm1, %v4511_v6  ;;  %3561 = vmatmul.msk.f32.gmra.mxu1 %vm310_vm1, %v4331_v33 }
 0x18f   : > { %v4513_v26 = vadd.f32 %v1153_v14, %v941_v40  ;;  %3541 = vmatmul.msk.f32.gmra.mxu0 %vm310_vm1, %v1514_v20  ;;  %v2041_v14 = vld [vmem:[#allocation2 + $0x1a] sm:$0xff] }
 0x191   : > { %5540 = vst [vmem:[#allocation12_spill] sm:$0xff] %v4513_v26 }
 0x193   : > { %3475 = vmatmul.msk.f32.gmra.mxu2 %vm310_vm1, %v1514_v20  ;;  %v4523_v52 = vpop.f32.mrf.mxu1  ;;  %v1208_v20 = vld [vmem:[#allocation2 + $0xa] sm:$0xff] }
 0x196   : > { %v1156_v53 = vpop.f32.mrf.mxu2  ;;  %3478 = vmatmul.msk.f32.vlgmr.msrb.gmra.mxu3 %vm310_vm1, %v1207_v17  ;;  %3562 = vmatmul.msk.f32.gmra.mxu1 %vm310_vm1, %v4343_v35 }
 0x197   : > { %v4525_v0 = vadd.f32 %v1156_v53, %v944_v4  ;;  %3542 = vmatmul.msk.f32.gmra.mxu0 %vm310_vm1, %v1515_v29  ;;  %v2042_v29 = vld [vmem:[#allocation2 + $0x22] sm:$0xff] }
 0x199   : > { %5542 = vst [vmem:[#allocation14_spill] sm:$0xff] %v4525_v0  ;;  %v947_v40 = vpop.f32.mrf.mxu3 }
 0x19b   : > { %3580 = vmatmul.msk.f32.vlgmr.msra.gmra.mxu2 %vm310_vm1, %v2041_v14  ;;  %v4532_v8 = vpop.f32.mrf.mxu1 }
 0x19e   : > { %v1159_v38 = vpop.f32.mrf.mxu2  ;;  %3479 = vmatmul.msk.f32.gmra.mxu3 %vm310_vm1, %v1208_v20  ;;  %3563 = vmatmul.msk.f32.gmra.mxu1 %vm310_vm1, %v4355_v43 }
 0x19f   : > { %v4536_v4 = vadd.f32 %v1159_v38, %v947_v40  ;;  %3543 = vmatmul.msk.f32.gmra.mxu0 %vm310_vm1, %v1516_v37  ;;  %v4552_v37 = vpop.f32.mrf.mxu0  ;;  %v4554_v40 = vld [vmem:[#allocation2 + $0x32] sm:$0xff] }
 0x1a0   : > { %5546 = vst [vmem:[#allocation18_spill] sm:$0xff] %v4552_v37 }
 0x1a1   : > { %5544 = vst [vmem:[#allocation16_spill] sm:$0xff] %v4536_v4  ;;  %v950_v17 = vpop.f32.mrf.mxu3 }
 0x1a3   : > { %3581 = vmatmul.msk.f32.gmra.mxu2 %vm310_vm1, %v2042_v29  ;;  %v4543_v53 = vpop.f32.mrf.mxu1 }
 0x1a6   : > { %v1162_v0 = vpop.f32.mrf.mxu2  ;;  %3480 = vmatmul.msk.f32.gmra.mxu3 %vm310_vm1, %v2041_v14  ;;  %3564 = vmatmul.msk.f32.gmra.mxu1 %vm310_vm1, %v4367_v51  ;;  %v4567_v14 = vld [vmem:[#allocation2 + $0x3a] sm:$0xff] }
 0x1a7   : > { %v4545_v26 = vadd.f32 %v1162_v0, %v950_v17  ;;  %3648 = vmatmul.msk.f32.vlgmr.msra.gmra.mxu0 %vm310_vm1, %v4167_v12  ;;  %v4569_v37 = vpop.f32.mrf.mxu0 }
 0x1a8   : > { %5548 = vst [vmem:[#allocation20_spill] sm:$0xff] %v4569_v37 }
 0x1a9   : > { %5545 = vst [vmem:[#allocation17_spill] sm:$0xff] %v4545_v26  ;;  %v953_v38 = vpop.f32.mrf.mxu3  ;;  %v4615_v26 = vld [vmem:[#allocation2 + $0x62] sm:$0xff] }
 0x1ab   : > { %3582 = vmatmul.msk.f32.gmra.mxu2 %vm310_vm1, %v4554_v40  ;;  %v4558_v20 = vpop.f32.mrf.mxu1 }
 0x1ae   : > { %v1165_v0 = vpop.f32.mrf.mxu2  ;;  %3481 = vmatmul.msk.f32.gmra.mxu3 %vm310_vm1, %v2042_v29  ;;  %3565 = vmatmul.msk.f32.gmra.mxu1 %vm310_vm1, %v4379_v59  ;;  %v4583_v29 = vld [vmem:[#allocation2 + $0x4a] sm:$0xff] }
 0x1af   : > { %v4560_v17 = vadd.f32 %v1165_v0, %v953_v38  ;;  %3649 = vmatmul.msk.f32.gmra.mxu0 %vm310_vm1, %v4179_v22  ;;  %v4587_v37 = vpop.f32.mrf.mxu0 }
 0x1b0   : > { %5550 = vst [vmem:[#allocation22_spill] sm:$0xff] %v4587_v37 }
 0x1b1   : > { %5547 = vst [vmem:[#allocation19_spill] sm:$0xff] %v4560_v17  ;;  %v956_v12 = vpop.f32.mrf.mxu3 }
 0x1b3   : > { %3583 = vmatmul.msk.f32.gmra.mxu2 %vm310_vm1, %v4567_v14  ;;  %v4573_v48 = vpop.f32.mrf.mxu1 }
 0x1b6   : > { %v1168_v38 = vpop.f32.mrf.mxu2  ;;  %3482 = vmatmul.msk.f32.gmra.mxu3 %vm310_vm1, %v4554_v40  ;;  %3566 = vmatmul.msk.f32.gmra.mxu1 %vm310_vm1, %v4389_v3 }
 0x1b7   : > { %v4575_v0 = vadd.f32 %v1168_v38, %v956_v12  ;;  %3650 = vmatmul.msk.f32.gmra.mxu0 %vm310_vm1, %v4191_v32 }
 0x1b9   : > { %5549 = vst [vmem:[#allocation21_spill] sm:$0xff] %v4575_v0  ;;  %v959_v22 = vpop.f32.mrf.mxu3  ;;  %v4599_v0 = vld [vmem:[#allocation2 + $0x52] sm:$0xff] }
 0x1bb   : > { %3584 = vmatmul.msk.f32.gmra.mxu2 %vm310_vm1, %v4583_v29  ;;  %v4595_v32 = vpop.f32.mrf.mxu1 }
 0x1be   : > { %v1171_v17 = vpop.f32.mrf.mxu2  ;;  %3483 = vmatmul.msk.f32.gmra.mxu3 %vm310_vm1, %v4567_v14  ;;  %3567 = vmatmul.msk.f32.gmra.mxu1 %vm310_vm1, %v4401_v9 }
 0x1bf   : > { %v4589_v12 = vadd.f32 %v1171_v17, %v959_v22  ;;  %3651 = vmatmul.msk.f32.gmra.mxu0 %vm310_vm1, %v4203_v44  ;;  %v4603_v17 = vpop.f32.mrf.mxu0 }
 0x1c0   : > { %5552 = vst [vmem:[#allocation24_spill] sm:$0xff] %v4603_v17 }
 0x1c1   : > { %5551 = vst [vmem:[#allocation23_spill] sm:$0xff] %v4589_v12  ;;  %v962_v38 = vpop.f32.mrf.mxu3 }
 0x1c3   : > { %3585 = vmatmul.msk.f32.gmra.mxu2 %vm310_vm1, %v4599_v0  ;;  %v4613_v44 = vpop.f32.mrf.mxu1 }
 0x1c6   : > { %v1174_v37 = vpop.f32.mrf.mxu2  ;;  %3484 = vmatmul.msk.f32.gmra.mxu3 %vm310_vm1, %v4583_v29  ;;  %3568 = vmatmul.msk.f32.gmra.mxu1 %vm310_vm1, %v4413_v18 }
 0x1c7   : > { %v4605_v22 = vadd.f32 %v1174_v37, %v962_v38  ;;  %3652 = vmatmul.msk.f32.gmra.mxu0 %vm310_vm1, %v4215_v54  ;;  %v4627_v54 = vpop.f32.mrf.mxu0 }
 0x1c8   : > { %5555 = vst [vmem:[#allocation27_spill] sm:$0xff] %v4627_v54  ;;  %v4643_v54 = vld [vmem:[#allocation2 + $0x7a] sm:$0xff] }
 0x1c9   : > { %5553 = vst [vmem:[#allocation25_spill] sm:$0xff] %v4605_v22  ;;  %v965_v12 = vpop.f32.mrf.mxu3  ;;  %v4629_v22 = vld [vmem:[#allocation2 + $0x6a] sm:$0xff] }
 0x1cb   : > { %3586 = vmatmul.msk.f32.gmra.mxu2 %vm310_vm1, %v4615_v26  ;;  %v4633_v4 = vpop.f32.mrf.mxu1 }
 0x1ce   : > { %v1177_v17 = vpop.f32.mrf.mxu2  ;;  %3485 = vmatmul.msk.f32.gmra.mxu3 %vm310_vm1, %v4599_v0  ;;  %3569 = vmatmul.msk.f32.gmra.mxu1 %vm310_vm1, %v4425_v27 }
 0x1cf   : > { %v4619_v37 = vadd.f32 %v1177_v17, %v965_v12  ;;  %3653 = vmatmul.msk.f32.gmra.mxu0 %vm310_vm1, %v4227_v1 }
 0x1d1   : > { %5554 = vst [vmem:[#allocation26_spill] sm:$0xff] %v4619_v37  ;;  %v968_v38 = vpop.f32.mrf.mxu3  ;;  %v4645_v37 = vpop.f32.mrf.mxu0 }
 0x1d2   : > { %5557 = vst [vmem:[#allocation29_spill] sm:$0xff] %v4645_v37 }
 0x1d3   : > { %3587 = vmatmul.msk.f32.gmra.mxu2 %vm310_vm1, %v4629_v22  ;;  %v4649_v60 = vpop.f32.mrf.mxu1 }
 0x1d4   : > { %5558 = vst [vmem:[#allocation30_spill] sm:$0xff] %v4649_v60 }
 0x1d6   : > { %v1180_v12 = vpop.f32.mrf.mxu2  ;;  %3486 = vmatmul.msk.f32.gmra.mxu3 %vm310_vm1, %v4615_v26  ;;  %3570 = vmatmul.msk.f32.gmra.mxu1 %vm310_vm1, %v4437_v39 }
 0x1d7   : > { %v4635_v17 = vadd.f32 %v1180_v12, %v968_v38  ;;  %3654 = vmatmul.msk.f32.gmra.mxu0 %vm310_vm1, %v4239_v13 }
 0x1d9   : > { %5556 = vst [vmem:[#allocation28_spill] sm:$0xff] %v4635_v17  ;;  %v971_v1 = vpop.f32.mrf.mxu3  ;;  %v4659_v17 = vld [vmem:[#allocation2 + $0x82] sm:$0xff]  ;;  %v4663_v37 = vpop.f32.mrf.mxu0 }
 0x1da   : > { %5560 = vst [vmem:[#allocation32_spill] sm:$0xff] %v4663_v37 }
 0x1db   : > { %3588 = vmatmul.msk.f32.gmra.mxu2 %vm310_vm1, %v4643_v54 }
 0x1de   : > { %v1183_v38 = vpop.f32.mrf.mxu2  ;;  %3487 = vmatmul.msk.f32.gmra.mxu3 %vm310_vm1, %v4629_v22  ;;  %3571 = vmatmul.msk.f32.gmra.mxu1 %vm310_vm1, %v4447_v46 }
 0x1df   : > { %v4651_v12 = vadd.f32 %v1183_v38, %v971_v1  ;;  %3655 = vmatmul.msk.f32.gmra.mxu0 %vm310_vm1, %v4251_v24  ;;  %v4671_v24 = vpop.f32.mrf.mxu1 }
 0x1e0   : > { %5562 = vst [vmem:[#allocation34_spill] sm:$0xff] %v4671_v24 }
 0x1e1   : > { %5559 = vst [vmem:[#allocation31_spill] sm:$0xff] %v4651_v12  ;;  %v974_v13 = vpop.f32.mrf.mxu3  ;;  %v4675_v12 = vld [vmem:[#allocation2 + $0x92] sm:$0xff] }
 0x1e3   : > { %3589 = vmatmul.msk.f32.gmra.mxu2 %vm310_vm1, %v4659_v17 }
 0x1e6   : > { %v1186_v60 = vpop.f32.mrf.mxu2  ;;  %3488 = vmatmul.msk.f32.gmra.mxu3 %vm310_vm1, %v4643_v54  ;;  %3572 = vmatmul.msk.f32.gmra.mxu1 %vm310_vm1, %v4459_v61 }
 0x1e7   : > { %v4665_v1 = vadd.f32 %v1186_v60, %v974_v13  ;;  %3656 = vmatmul.msk.f32.gmra.mxu0 %vm310_vm1, %v4266_v36  ;;  %v4679_v60 = vpop.f32.mrf.mxu0  ;;  %v4689_v36 = vpop.f32.mrf.mxu1 }
 0x1e8   : > { %5563 = vst [vmem:[#allocation35_spill] sm:$0xff] %v4679_v60 }
 0x1e9   : > { %5561 = vst [vmem:[#allocation33_spill] sm:$0xff] %v4665_v1  ;;  %v977_v38 = vpop.f32.mrf.mxu3  ;;  %v4691_v1 = vld [vmem:[#allocation2 + $0x9a] sm:$0xff] }
 0x1ea   : > { %5565 = vst [vmem:[#allocation37_spill] sm:$0xff] %v4689_v36  ;;  %v4705_v36 = vld [vmem:[#allocation2 + $0xaa] sm:$0xff] }
 0x1eb   : > { %3590 = vmatmul.msk.f32.gmra.mxu2 %vm310_vm1, %v4675_v12 }
 0x1ee   : > { %v1189_v37 = vpop.f32.mrf.mxu2  ;;  %3489 = vmatmul.msk.f32.gmra.mxu3 %vm310_vm1, %v4659_v17  ;;  %3573 = vmatmul.msk.f32.gmra.mxu1 %vm310_vm1, %v4479_v19 }
 0x1ef   : > { %v4681_v13 = vadd.f32 %v1189_v37, %v977_v38  ;;  %3657 = vmatmul.msk.f32.gmra.mxu0 %vm310_vm1, %v4282_v50  ;;  %v4703_v50 = vpop.f32.mrf.mxu0 }
 0x1f0   : > { %5567 = vst [vmem:[#allocation39_spill] sm:$0xff] %v4703_v50  ;;  %v4719_v50 = vld [vmem:[#allocation2 + $0xb2] sm:$0xff] }
 0x1f1   : > { %5564 = vst [vmem:[#allocation36_spill] sm:$0xff] %v4681_v13  ;;  %v980_v24 = vpop.f32.mrf.mxu3  ;;  %v4709_v13 = vpop.f32.mrf.mxu1 }
 0x1f2   : > { %5568 = vst [vmem:[#allocation40_spill] sm:$0xff] %v4709_v13  ;;  %v4725_v13 = vld [vmem:[#allocation2 + $0x181] sm:$0xff] }
 0x1f3   : > { %3591 = vmatmul.msk.f32.gmra.mxu2 %vm310_vm1, %v4691_v1  ;;  %5571 = vst [vmem:[#allocation43_spill] sm:$0xff] %v4725_v13 }
 0x1f6   : > { %v1192_v60 = vpop.f32.mrf.mxu2  ;;  %3490 = vmatmul.msk.f32.gmra.mxu3 %vm310_vm1, %v4675_v12  ;;  %3574 = vmatmul.msk.f32.gmra.mxu1 %vm310_vm1, %v4499_v45 }
 0x1f7   : > { %v4695_v37 = vadd.f32 %v1192_v60, %v980_v24  ;;  %3658 = vmatmul.msk.f32.gmra.mxu0 %vm310_vm1, %v4295_v62 }
 0x1f9   : > { %5566 = vst [vmem:[#allocation38_spill] sm:$0xff] %v4695_v37  ;;  %v983_v38 = vpop.f32.mrf.mxu3  ;;  %v4721_v37 = vpop.f32.mrf.mxu0 }
 0x1fa   : > { %5570 = vst [vmem:[#allocation42_spill] sm:$0xff] %v4721_v37  ;;  %v4737_v37 = vld [vmem:[#allocation2 + $0xc2] sm:$0xff] }
 0x1fb   : > { %3592 = vmatmul.msk.f32.gmra.mxu2 %vm310_vm1, %v4705_v36 }
 0x1fe   : > { %v1195_v24 = vpop.f32.mrf.mxu2  ;;  %3491 = vmatmul.msk.f32.gmra.mxu3 %vm310_vm1, %v4691_v1  ;;  %3575 = vmatmul.msk.f32.gmra.mxu1 %vm310_vm1, %v4511_v6 }
 0x1ff   : > { %v4711_v60 = vadd.f32 %v1195_v24, %v983_v38  ;;  %3659 = vmatmul.msk.f32.gmra.mxu0 %vm310_vm1, %v4307_v10  ;;  %v4727_v38 = vpop.f32.mrf.mxu1 }
 0x200   : > { %5572 = vst [vmem:[#allocation44_spill] sm:$0xff] %v4727_v38  ;;  %v4743_v38 = vld [vmem:[#allocation2 + $0x189] sm:$0xff] }
 0x201   : > { %5569 = vst [vmem:[#allocation41_spill] sm:$0xff] %v4711_v60  ;;  %v986_v62 = vpop.f32.mrf.mxu3  ;;  %v4741_v6 = vpop.f32.mrf.mxu0 }
 0x202   : > { %5574 = vst [vmem:[#allocation46_spill] sm:$0xff] %v4741_v6 }
 0x203   : > { %3593 = vmatmul.msk.f32.gmra.mxu2 %vm310_vm1, %v4719_v50  ;;  %5575 = vst [vmem:[#allocation47_spill] sm:$0xff] %v4743_v38 }
 0x206   : > { %v1198_v24 = vpop.f32.mrf.mxu2  ;;  %3492 = vmatmul.msk.f32.gmra.mxu3 %vm310_vm1, %v4705_v36  ;;  %3576 = vmatmul.msk.f32.gmra.mxu1 %vm310_vm1, %v4725_v13  ;;  %v4755_v13 = vld [vmem:[#allocation2 + $0xca] sm:$0xff] }
 0x207   : > { %v4729_v60 = vadd.f32 %v1198_v24, %v986_v62  ;;  %3660 = vmatmul.msk.f32.gmra.mxu0 %vm310_vm1, %v4319_v25  ;;  %v4751_v25 = vpop.f32.mrf.mxu1 }
 0x208   : > { %5577 = vst [vmem:[#allocation49_spill] sm:$0xff] %v4751_v25 }
 0x209   : > { %5573 = vst [vmem:[#allocation45_spill] sm:$0xff] %v4729_v60  ;;  %v989_v10 = vpop.f32.mrf.mxu3 }
 0x20b   : > { %3594 = vmatmul.msk.f32.gmra.mxu2 %vm310_vm1, %v4737_v37 }
 0x20e   : > { %v1201_v62 = vpop.f32.mrf.mxu2  ;;  %3493 = vmatmul.msk.f32.gmra.mxu3 %vm310_vm1, %v4719_v50  ;;  %3577 = vmatmul.msk.f32.gmra.mxu1 %vm310_vm1, %v4743_v38 }
 0x20f   : > { %v4745_v24 = vadd.f32 %v1201_v62, %v989_v10  ;;  %3661 = vmatmul.msk.f32.gmra.mxu0 %vm310_vm1, %v4331_v33  ;;  %v4759_v10 = vpop.f32.mrf.mxu0  ;;  %v4769_v33 = vpop.f32.mrf.mxu1 }
 0x210   : > { %5578 = vst [vmem:[#allocation50_spill] sm:$0xff] %v4759_v10 }
 0x211   : > { %5576 = vst [vmem:[#allocation48_spill] sm:$0xff] %v4745_v24  ;;  %v992_v60 = vpop.f32.mrf.mxu3  ;;  %v4771_v24 = vld [vmem:[#allocation2 + $0xda] sm:$0xff] }
 0x213   : > { %3595 = vmatmul.msk.f32.gmra.mxu2 %vm310_vm1, %v4755_v13 }
 0x216   : > { %v1204_v6 = vpop.f32.mrf.mxu2  ;;  %3494 = vmatmul.msk.f32.gmra.mxu3 %vm310_vm1, %v4737_v37  ;;  %3682 = vmatmul.msk.f32.vlgmr.msra.gmra.mxu1 %vm310_vm1, %v4554_v40 }
 0x217   : > { %v4761_v62 = vadd.f32 %v1204_v6, %v992_v60  ;;  %3662 = vmatmul.msk.f32.gmra.mxu0 %vm310_vm1, %v4343_v35  ;;  %v4784_v35 = vpop.f32.mrf.mxu0 }
 0x218   : > { %5579 = vst [vmem:[#allocation51_spill] sm:$0xff] %v4784_v35 }
 0x219   : > { %v1357_v25 = vpop.f32.mrf.mxu3 }
 0x21a   : > { %v1453_v38 = vadd.f32 %v1357_v25, %v4333_v34  ;;  %v4788_v25 = vld [vmem:[#allocation2 + $0xe2] sm:$0xff] }
 0x21b   : > { %3596 = vmatmul.msk.f32.gmra.mxu2 %vm310_vm1, %v4771_v24 }
 0x21c   : > { %v1731_v6 = vadd.f32 %v4341_v56, %v1453_v38 }
 0x21e   : > { %v2191_v60 = vpop.f32.mrf.mxu2  ;;  %v2009_v10 = vadd.f32 %v4523_v52, %v1731_v6  ;;  %3495 = vmatmul.msk.f32.gmra.mxu3 %vm310_vm1, %v4755_v13  ;;  %3683 = vmatmul.msk.f32.gmra.mxu1 %vm310_vm1, %v4567_v14  ;;  %v4793_v52 = vpop.f32.mrf.mxu1 }
 0x21f   : > { %3663 = vmatmul.msk.f32.gmra.mxu0 %vm310_vm1, %v4355_v43 }
 0x220   : > { %v4786_v34 = vadd.f32 %v2191_v60, %v2009_v10  ;;  %v4805_v10 = vld [vmem:[#allocation2 + $0xf2] sm:$0xff]  ;;  %v4807_v60 = vpop.f32.mrf.mxu0 }
 0x221   : > { %v1360_v40 = vpop.f32.mrf.mxu3  ;;  %5580 = vst [vmem:[#allocation52_spill] sm:$0xff] %v4807_v60  ;;  %v2332_v60 = vld [vmem:[#allocation2 + $0xc0] sm:$0xff] }
 0x222   : > { %v1454_v56 = vadd.f32 %v1360_v40, %v4345_v41 }
 0x223   : > { %3597 = vmatmul.msk.f32.gmra.mxu2 %vm310_vm1, %v4788_v25 }
 0x224   : > { %v1732_v38 = vadd.f32 %v4353_v42, %v1454_v56 }
 0x226   : > { %v2194_v43 = vpop.f32.mrf.mxu2  ;;  %v2010_v6 = vadd.f32 %v4532_v8, %v1732_v38  ;;  %3496 = vmatmul.msk.f32.gmra.mxu3 %vm310_vm1, %v4771_v24  ;;  %3684 = vmatmul.msk.f32.gmra.mxu1 %vm310_vm1, %v4583_v29  ;;  %v4813_v40 = vpop.f32.mrf.mxu1  ;;  %v4824_v38 = vld [vmem:[#allocation2 + $0xfa] sm:$0xff] }
 0x227   : > { %3664 = vmatmul.msk.f32.gmra.mxu0 %vm310_vm1, %v4367_v51 }
 0x228   : > { %v4803_v41 = vadd.f32 %v2194_v43, %v2010_v6 }
 0x229   : > { %v1363_v14 = vpop.f32.mrf.mxu3 }
 0x22a   : > { %v1455_v42 = vadd.f32 %v1363_v14, %v4357_v47 }
 0x22b   : > { %3598 = vmatmul.msk.f32.gmra.mxu2 %vm310_vm1, %v4805_v10 }
 0x22c   : > { %v1733_v8 = vadd.f32 %v4365_v49, %v1455_v42  ;;  %v4843_v42 = vld [vmem:[#allocation2 + $0x10a] sm:$0xff] }
 0x22e   : > { %v2197_v51 = vpop.f32.mrf.mxu2  ;;  %v2011_v56 = vadd.f32 %v4543_v53, %v1733_v8  ;;  %3497 = vmatmul.msk.f32.gmra.mxu3 %vm310_vm1, %v4788_v25  ;;  %3685 = vmatmul.msk.f32.gmra.mxu1 %vm310_vm1, %v4599_v0  ;;  %v4829_v53 = vpop.f32.mrf.mxu0 }
 0x22f   : > { %3665 = vmatmul.msk.f32.gmra.mxu0 %vm310_vm1, %v4379_v59  ;;  %5581 = vst [vmem:[#allocation53_spill] sm:$0xff] %v4829_v53  ;;  %v4837_v0 = vpop.f32.mrf.mxu1  ;;  %v2330_v53 = vld [vmem:[#allocation2 + $0xa8] sm:$0xff] }
 0x230   : > { %v4822_v47 = vadd.f32 %v2197_v51, %v2011_v56 }
 0x231   : > { %v1366_v29 = vpop.f32.mrf.mxu3 }
 0x232   : > { %v1456_v49 = vadd.f32 %v1366_v29, %v4369_v55 }
 0x233   : > { %3599 = vmatmul.msk.f32.gmra.mxu2 %vm310_vm1, %v4824_v38 }
 0x234   : > { %v1734_v43 = vadd.f32 %v4377_v58, %v1456_v49 }
 0x236   : > { %v2200_v6 = vpop.f32.mrf.mxu2  ;;  %v2012_v59 = vadd.f32 %v4558_v20, %v1734_v43  ;;  %3498 = vmatmul.msk.f32.gmra.mxu3 %vm310_vm1, %v4805_v10  ;;  %3686 = vmatmul.msk.f32.gmra.mxu1 %vm310_vm1, %v4615_v26  ;;  %v4849_v51 = vpop.f32.mrf.mxu0 }
 0x237   : > { %3666 = vmatmul.msk.f32.gmra.mxu0 %vm310_vm1, %v4389_v3  ;;  %5582 = vst [vmem:[#allocation54_spill] sm:$0xff] %v4849_v51  ;;  %v4860_v26 = vpop.f32.mrf.mxu1 }
 0x238   : > { %v4841_v55 = vadd.f32 %v2200_v6, %v2012_v59  ;;  %v4879_v6 = vld [vmem:[#allocation2 + $0x122] sm:$0xff] }
 0x239   : > { %v1369_v14 = vpop.f32.mrf.mxu3 }
 0x23a   : > { %v1457_v58 = vadd.f32 %v1369_v14, %v4381_v63 }
 0x23b   : > { %3600 = vmatmul.msk.f32.gmra.mxu2 %vm310_vm1, %v4843_v42 }
 0x23c   : > { %v1735_v20 = vadd.f32 %v4391_v5, %v1457_v58  ;;  %v4862_v5 = vld [vmem:[#allocation2 + $0x112] sm:$0xff]  ;;  %v4896_v58 = vld [vmem:[#allocation2 + $0x12a] sm:$0xff] }
 0x23e   : > { %v2203_v8 = vpop.f32.mrf.mxu2  ;;  %v2013_v3 = vadd.f32 %v4573_v48, %v1735_v20  ;;  %3499 = vmatmul.msk.f32.gmra.mxu3 %vm310_vm1, %v4824_v38  ;;  %3687 = vmatmul.msk.f32.gmra.mxu1 %vm310_vm1, %v4629_v22  ;;  %v4875_v22 = vpop.f32.mrf.mxu0 }
 0x23f   : > { %3667 = vmatmul.msk.f32.gmra.mxu0 %vm310_vm1, %v4401_v9  ;;  %5583 = vst [vmem:[#allocation55_spill] sm:$0xff] %v4875_v22  ;;  %v2322_v22 = vld [vmem:[#allocation2 + $0x48] sm:$0xff] }
 0x240   : > { %v4858_v63 = vadd.f32 %v2203_v8, %v2013_v3 }
 0x241   : > { %v1372_v56 = vpop.f32.mrf.mxu3 }
 0x242   : > { %v1458_v29 = vadd.f32 %v1372_v56, %v4393_v7  ;;  %v4915_v56 = vld [vmem:[#allocation2 + $0x13a] sm:$0xff] }
 0x243   : > { %3601 = vmatmul.msk.f32.gmra.mxu2 %vm310_vm1, %v4862_v5 }
 0x244   : > { %v1736_v48 = vadd.f32 %v4403_v15, %v1458_v29  ;;  %v4932_v29 = vld [vmem:[#allocation2 + $0x142] sm:$0xff] }
 0x246   : > { %v2206_v49 = vpop.f32.mrf.mxu2  ;;  %v2014_v9 = vadd.f32 %v4595_v32, %v1736_v48  ;;  %3500 = vmatmul.msk.f32.gmra.mxu3 %vm310_vm1, %v4843_v42  ;;  %3688 = vmatmul.msk.f32.gmra.mxu1 %vm310_vm1, %v4643_v54  ;;  %v4884_v32 = vpop.f32.mrf.mxu1 }
 0x247   : > { %3668 = vmatmul.msk.f32.gmra.mxu0 %vm310_vm1, %v4413_v18  ;;  %v4898_v20 = vpop.f32.mrf.mxu0 }
 0x248   : > { %v4877_v7 = vadd.f32 %v2206_v49, %v2014_v9  ;;  %5584 = vst [vmem:[#allocation56_spill] sm:$0xff] %v4898_v20  ;;  %v4949_v49 = vld [vmem:[#allocation2 + $0x152] sm:$0xff]  ;;  %v4964_v9 = vld [vmem:[#allocation2 + $0x15a] sm:$0xff] }
 0x249   : > { %v1375_v43 = vpop.f32.mrf.mxu3 }
 0x24a   : > { %v1459_v15 = vadd.f32 %v1375_v43, %v4405_v16 }
 0x24b   : > { %3602 = vmatmul.msk.f32.gmra.mxu2 %vm310_vm1, %v4879_v6 }
 0x24c   : > { %v1737_v59 = vadd.f32 %v4422_v23, %v1459_v15 }
 0x24e   : > { %v2209_v18 = vpop.f32.mrf.mxu2  ;;  %v2015_v14 = vadd.f32 %v4613_v44, %v1737_v59  ;;  %3501 = vmatmul.msk.f32.gmra.mxu3 %vm310_vm1, %v4862_v5  ;;  %3689 = vmatmul.msk.f32.gmra.mxu1 %vm310_vm1, %v4659_v17  ;;  %v4904_v8 = vpop.f32.mrf.mxu1 }
 0x24f   : > { %3669 = vmatmul.msk.f32.gmra.mxu0 %vm310_vm1, %v4425_v27 }
 0x250   : > { %v4894_v16 = vadd.f32 %v2209_v18, %v2015_v14  ;;  %v4996_v18 = vld [vmem:[#allocation2 + $0x172] sm:$0xff]  ;;  %v5586_v14 = vld [vmem:[#allocation9_spill] sm:$0xff] }
 0x251   : > { %v1378_v54 = vpop.f32.mrf.mxu3 }
 0x252   : > { %v1460_v23 = vadd.f32 %v1378_v54, %v4415_v21 }
 0x253   : > { %3603 = vmatmul.msk.f32.gmra.mxu2 %vm310_vm1, %v4896_v58 }
 0x254   : > { %v1738_v44 = vadd.f32 %v4434_v31, %v1460_v23  ;;  %v5587_v23 = vld [vmem:[#allocation43_spill] sm:$0xff] }
 0x256   : > { %v2016_v27 = vadd.f32 %v4633_v4, %v1738_v44  ;;  %3502 = vmatmul.msk.f32.gmra.mxu3 %vm310_vm1, %v4879_v6  ;;  %v2212_v17 = vpop.f32.mrf.mxu2  ;;  %3690 = vmatmul.msk.f32.gmra.mxu1 %vm310_vm1, %v4675_v12  ;;  %v4922_v4 = vpop.f32.mrf.mxu0 }
 0x257   : > { %3670 = vmatmul.msk.f32.gmra.mxu0 %vm310_vm1, %v4437_v39  ;;  %v4928_v39 = vpop.f32.mrf.mxu1 }
 0x258   : > { %v4913_v21 = vadd.f32 %v2212_v17, %v2016_v27  ;;  %v5013_v27 = vld [vmem:[#allocation2 + $0x182] sm:$0xff] }
 0x259   : > { %v1381_v3 = vpop.f32.mrf.mxu3  ;;  %v5588_v17 = vld [vmem:[#allocation12_spill] sm:$0xff] }
 0x25a   : > { %v4918_v31 = vadd.f32 %v1381_v3, %v4427_v30 }
 0x25b   : > { %3604 = vmatmul.msk.f32.gmra.mxu2 %vm310_vm1, %v4915_v56 }
 0x25e   : > { %3503 = vmatmul.msk.f32.gmra.mxu3 %vm310_vm1, %v4896_v58  ;;  %3691 = vmatmul.msk.f32.gmra.mxu1 %vm310_vm1, %v4691_v1  ;;  %v4939_v48 = vpop.f32.mrf.mxu0 }
 0x25f   : > { %3671 = vmatmul.msk.f32.gmra.mxu0 %vm310_vm1, %v4447_v46  ;;  %v4947_v46 = vpop.f32.mrf.mxu1 }
 0x261   : > { %v1384_v12 = vpop.f32.mrf.mxu3 }
 0x262   : > { %v4935_v30 = vadd.f32 %v1384_v12, %v4439_v2 }
 0x263   : > { %3605 = vmatmul.msk.f32.gmra.mxu2 %vm310_vm1, %v4932_v29 }
 0x266   : > { %3504 = vmatmul.msk.f32.gmra.mxu3 %vm310_vm1, %v4915_v56  ;;  %3692 = vmatmul.msk.f32.gmra.mxu1 %vm310_vm1, %v4705_v36 }
 0x267   : > { %3672 = vmatmul.msk.f32.gmra.mxu0 %vm310_vm1, %v4459_v61  ;;  %v4962_v61 = vpop.f32.mrf.mxu0  ;;  %v4971_v43 = vpop.f32.mrf.mxu1 }
 0x269   : > { %v1387_v1 = vpop.f32.mrf.mxu3 }
 0x26a   : > { %v4952_v2 = vadd.f32 %v1387_v1, %v4451_v57  ;;  %v5589_v1 = vld [vmem:[#allocation47_spill] sm:$0xff] }
 0x26b   : > { %3606 = vmatmul.msk.f32.gmra.mxu2 %vm310_vm1, %v4949_v49 }
 0x26e   : > { %3505 = vmatmul.msk.f32.gmra.mxu3 %vm310_vm1, %v4932_v29  ;;  %3693 = vmatmul.msk.f32.gmra.mxu1 %vm310_vm1, %v4719_v50  ;;  %v4979_v50 = vld [vmem:[#allocation2 + $0x16a] sm:$0xff] }
 0x26f   : > { %3673 = vmatmul.msk.f32.gmra.mxu0 %vm310_vm1, %v4479_v19  ;;  %v4981_v15 = vpop.f32.mrf.mxu0  ;;  %v4988_v59 = vpop.f32.mrf.mxu1 }
 0x271   : > { %v1390_v36 = vpop.f32.mrf.mxu3 }
 0x272   : > { %v4967_v57 = vadd.f32 %v1390_v36, %v4467_v11 }
 0x273   : > { %3607 = vmatmul.msk.f32.gmra.mxu2 %vm310_vm1, %v4964_v9 }
 0x276   : > { %3506 = vmatmul.msk.f32.gmra.mxu3 %vm310_vm1, %v4949_v49  ;;  %3694 = vmatmul.msk.f32.gmra.mxu1 %vm310_vm1, %v4737_v37 }
 0x277   : > { %3674 = vmatmul.msk.f32.gmra.mxu0 %vm310_vm1, %v4499_v45  ;;  %v5585_v45 = vld [vmem:[#allocation11_spill] sm:$0xff]  ;;  %v5003_v54 = vpop.f32.mrf.mxu0  ;;  %v5009_v44 = vpop.f32.mrf.mxu1 }
 0x279   : > { %v1393_v19 = vpop.f32.mrf.mxu3 }
 0x27a   : > { %v4984_v11 = vadd.f32 %v1393_v19, %v4481_v28  ;;  %v5030_v19 = vld [vmem:[#allocation2 + $0x18a] sm:$0xff] }
 0x27b   : > { %3608 = vmatmul.msk.f32.gmra.mxu2 %vm310_vm1, %v4979_v50 }
 0x27e   : > { %3507 = vmatmul.msk.f32.gmra.mxu3 %vm310_vm1, %v4964_v9  ;;  %3695 = vmatmul.msk.f32.gmra.mxu1 %vm310_vm1, %v4755_v13 }
 0x27f   : > { %3675 = vmatmul.msk.f32.gmra.mxu0 %vm310_vm1, %v5585_v45  ;;  %v5020_v12 = vpop.f32.mrf.mxu0  ;;  %v5591_v45 = vld [vmem:[#allocation14_spill] sm:$0xff] }
 0x281   : > { %v1396_v37 = vpop.f32.mrf.mxu3 }
 0x282   : > { %v4999_v28 = vadd.f32 %v1396_v37, %v5586_v14  ;;  %v2320_v14 = vld [vmem:[#allocation2 + $0x30] sm:$0xff] }
 0x283   : > { %3609 = vmatmul.msk.f32.gmra.mxu2 %vm310_vm1, %v4996_v18 }
 0x286   : > { %3508 = vmatmul.msk.f32.gmra.mxu3 %vm310_vm1, %v4979_v50  ;;  %3696 = vmatmul.msk.f32.gmra.mxu1 %vm310_vm1, %v4771_v24  ;;  %v5028_v24 = vpop.f32.mrf.mxu1 }
 0x287   : > { %3676 = vmatmul.msk.f32.gmra.mxu0 %vm310_vm1, %v5587_v23  ;;  %5590 = vst [vmem:[#allocation11_spill] sm:$0xff] %v5028_v24  ;;  %v5614_v24 = vld [vmem:[#allocation48_spill] sm:$0xff] }
 0x289   : > { %v1399_v13 = vpop.f32.mrf.mxu3 }
 0x28a   : > { %v5016_v3 = vadd.f32 %v1399_v13, %v5588_v17  ;;  %v5592_v13 = vld [vmem:[#allocation16_spill] sm:$0xff] }
 0x28b   : > { %3610 = vmatmul.msk.f32.gmra.mxu2 %vm310_vm1, %v5013_v27 }
 0x28e   : > { %3509 = vmatmul.msk.f32.gmra.mxu3 %vm310_vm1, %v4996_v18  ;;  %3697 = vmatmul.msk.f32.gmra.mxu1 %vm310_vm1, %v4788_v25  ;;  %v5043_v17 = vpop.f32.mrf.mxu1 }
 0x28f   : > { %3677 = vmatmul.msk.f32.gmra.mxu0 %vm310_vm1, %v5589_v1  ;;  %5593 = vst [vmem:[#allocation9_spill] sm:$0xff] %v5043_v17  ;;  %v2321_v1 = vld [vmem:[#allocation2 + $0x38] sm:$0xff]  ;;  %v2331_v17 = vld [vmem:[#allocation2 + $0xb0] sm:$0xff] }
 0x291   : > { %v1402_v36 = vpop.f32.mrf.mxu3 }
 0x292   : > { %v5033_v37 = vadd.f32 %v1402_v36, %v5591_v45  ;;  %v5594_v45 = vld [vmem:[#allocation17_spill] sm:$0xff] }
 0x293   : > { %3611 = vmatmul.msk.f32.gmra.mxu2 %vm310_vm1, %v5030_v19 }
 0x296   : > { %3614 = vmatmul.msk.f32.vlgmr.msra.gmra.mxu3 %vm310_vm1, %v2320_v14  ;;  %3698 = vmatmul.msk.f32.gmra.mxu1 %vm310_vm1, %v4805_v10  ;;  %v5051_v14 = vpop.f32.mrf.mxu1 }
 0x297   : > { %5595 = vst [vmem:[#allocation43_spill] sm:$0xff] %v5051_v14  ;;  %v2326_v14 = vld [vmem:[#allocation2 + $0x78] sm:$0xff] }
 0x299   : > { %v1405_v23 = vpop.f32.mrf.mxu3 }
 0x29a   : > { %v5041_v25 = vadd.f32 %v1405_v23, %v5592_v13  ;;  %v5596_v23 = vld [vmem:[#allocation19_spill] sm:$0xff] }
 0x29e   : > { %3615 = vmatmul.msk.f32.gmra.mxu3 %vm310_vm1, %v2321_v1  ;;  %3699 = vmatmul.msk.f32.gmra.mxu1 %vm310_vm1, %v4824_v38  ;;  %v2323_v1 = vld [vmem:[#allocation2 + $0x50] sm:$0xff]  ;;  %v5060_v38 = vpop.f32.mrf.mxu1 }
 0x29f   : > { %5597 = vst [vmem:[#allocation12_spill] sm:$0xff] %v5060_v38  ;;  %v2325_v38 = vld [vmem:[#allocation2 + $0x68] sm:$0xff] }
 0x2a1   : > { %v1408_v36 = vpop.f32.mrf.mxu3 }
 0x2a2   : > { %v5049_v20 = vadd.f32 %v1408_v36, %v5594_v45  ;;  %v5598_v45 = vld [vmem:[#allocation21_spill] sm:$0xff] }
 0x2a6   : > { %3616 = vmatmul.msk.f32.gmra.mxu3 %vm310_vm1, %v2322_v22  ;;  %3700 = vmatmul.msk.f32.gmra.mxu1 %vm310_vm1, %v4843_v42  ;;  %v2324_v22 = vld [vmem:[#allocation2 + $0x60] sm:$0xff]  ;;  %v5070_v42 = vpop.f32.mrf.mxu1 }
 0x2a7   : > { %5599 = vst [vmem:[#allocation47_spill] sm:$0xff] %v5070_v42  ;;  %v2327_v42 = vld [vmem:[#allocation2 + $0x80] sm:$0xff] }
 0x2a9   : > { %v1411_v10 = vpop.f32.mrf.mxu3 }
 0x2aa   : > { %v5057_v13 = vadd.f32 %v1411_v10, %v5596_v23  ;;  %v5600_v23 = vld [vmem:[#allocation23_spill] sm:$0xff] }
 0x2ae   : > { %3617 = vmatmul.msk.f32.gmra.mxu3 %vm310_vm1, %v2323_v1  ;;  %3701 = vmatmul.msk.f32.gmra.mxu1 %vm310_vm1, %v4862_v5 }
 0x2b1   : > { %v1414_v36 = vpop.f32.mrf.mxu3 }
 0x2b2   : > { %v5065_v51 = vadd.f32 %v1414_v36, %v5598_v45  ;;  %v5601_v36 = vld [vmem:[#allocation25_spill] sm:$0xff] }
 0x2b6   : > { %3618 = vmatmul.msk.f32.gmra.mxu3 %vm310_vm1, %v2324_v22  ;;  %3702 = vmatmul.msk.f32.gmra.mxu1 %vm310_vm1, %v4879_v6  ;;  %v5081_v22 = vpop.f32.mrf.mxu1 }
 0x2b7   : > { %5602 = vst [vmem:[#allocation14_spill] sm:$0xff] %v5081_v22  ;;  %v2328_v22 = vld [vmem:[#allocation2 + $0x90] sm:$0xff] }
 0x2b9   : > { %v1417_v10 = vpop.f32.mrf.mxu3 }
 0x2ba   : > { %v5073_v1 = vadd.f32 %v1417_v10, %v5600_v23  ;;  %v5603_v10 = vld [vmem:[#allocation26_spill] sm:$0xff] }
 0x2be   : > { %3619 = vmatmul.msk.f32.gmra.mxu3 %vm310_vm1, %v2325_v38  ;;  %3703 = vmatmul.msk.f32.gmra.mxu1 %vm310_vm1, %v4896_v58  ;;  %v3026_v38 = vpop.f32.mrf.mxu1 }
 0x2c1   : > { %v1420_v5 = vpop.f32.mrf.mxu3 }
 0x2c2   : > { %v5079_v45 = vadd.f32 %v1420_v5, %v5601_v36  ;;  %v5604_v5 = vld [vmem:[#allocation28_spill] sm:$0xff] }
 0x2c6   : > { %3620 = vmatmul.msk.f32.gmra.mxu3 %vm310_vm1, %v2326_v14  ;;  %3704 = vmatmul.msk.f32.gmra.mxu1 %vm310_vm1, %v4915_v56  ;;  %v5096_v14 = vpop.f32.mrf.mxu1 }
 0x2c9   : > { %v1423_v6 = vpop.f32.mrf.mxu3 }
 0x2ca   : > { %v5087_v23 = vadd.f32 %v1423_v6, %v5603_v10  ;;  %v5605_v6 = vld [vmem:[#allocation31_spill] sm:$0xff] }
 0x2ce   : > { %3621 = vmatmul.msk.f32.gmra.mxu3 %vm310_vm1, %v2327_v42  ;;  %3705 = vmatmul.msk.f32.gmra.mxu1 %vm310_vm1, %v4932_v29  ;;  %v2329_v42 = vld [vmem:[#allocation2 + $0x98] sm:$0xff]  ;;  %v5106_v29 = vpop.f32.mrf.mxu1 }
 0x2d1   : > { %v1426_v58 = vpop.f32.mrf.mxu3 }
 0x2d2   : > { %v5093_v36 = vadd.f32 %v1426_v58, %v5604_v5  ;;  %v5606_v5 = vld [vmem:[#allocation33_spill] sm:$0xff] }
 0x2d6   : > { %3622 = vmatmul.msk.f32.gmra.mxu3 %vm310_vm1, %v2328_v22  ;;  %3706 = vmatmul.msk.f32.gmra.mxu1 %vm310_vm1, %v4949_v49 }
 0x2d9   : > { %v1429_v56 = vpop.f32.mrf.mxu3 }
 0x2da   : > { %v5101_v10 = vadd.f32 %v1429_v56, %v5605_v6  ;;  %v5607_v56 = vld [vmem:[#allocation36_spill] sm:$0xff] }
 0x2de   : > { %3623 = vmatmul.msk.f32.gmra.mxu3 %vm310_vm1, %v2329_v42  ;;  %3707 = vmatmul.msk.f32.gmra.mxu1 %vm310_vm1, %v4964_v9  ;;  %v5117_v42 = vpop.f32.mrf.mxu1 }
 0x2e1   : > { %v1432_v58 = vpop.f32.mrf.mxu3 }
 0x2e2   : > { %v5109_v22 = vadd.f32 %v1432_v58, %v5606_v5  ;;  %v5608_v58 = vld [vmem:[#allocation38_spill] sm:$0xff] }
 0x2e6   : > { %3624 = vmatmul.msk.f32.gmra.mxu3 %vm310_vm1, %v2330_v53  ;;  %3708 = vmatmul.msk.f32.gmra.mxu1 %vm310_vm1, %v4979_v50  ;;  %v5125_v53 = vpop.f32.mrf.mxu1 }
 0x2e9   : > { %v1435_v49 = vpop.f32.mrf.mxu3 }
 0x2ea   : > { %v5115_v6 = vadd.f32 %v1435_v49, %v5607_v56  ;;  %v5610_v49 = vld [vmem:[#allocation41_spill] sm:$0xff] }
 0x2ee   : > { %3625 = vmatmul.msk.f32.gmra.mxu3 %vm310_vm1, %v2331_v17  ;;  %3709 = vmatmul.msk.f32.gmra.mxu1 %vm310_vm1, %v4996_v18  ;;  %v2333_v17 = vld [vmem:[#allocation2 + $0xc8] sm:$0xff]  ;;  %v5134_v18 = vpop.f32.mrf.mxu1 }
 0x2f1   : > { %v1438_v9 = vpop.f32.mrf.mxu3 }
 0x2f2   : > { %v5123_v5 = vadd.f32 %v1438_v9, %v5608_v58  ;;  %v5612_v58 = vld [vmem:[#allocation45_spill] sm:$0xff] }
 0x2f4   : > { %5609 = vst [vmem:[#allocation16_spill] sm:$0xff] %v5123_v5 }
 0x2f6   : > { %3626 = vmatmul.msk.f32.gmra.mxu3 %vm310_vm1, %v2332_v60  ;;  %3710 = vmatmul.msk.f32.gmra.mxu1 %vm310_vm1, %v5013_v27  ;;  %v2334_v60 = vld [vmem:[#allocation2 + $0xd8] sm:$0xff] }
 0x2f9   : > { %v1441_v50 = vpop.f32.mrf.mxu3 }
 0x2fa   : > { %v5131_v56 = vadd.f32 %v1441_v50, %v5610_v49  ;;  %v2335_v49 = vld [vmem:[#allocation2 + $0xe0] sm:$0xff] }
 0x2fc   : > { %5611 = vst [vmem:[#allocation17_spill] sm:$0xff] %v5131_v56 }
 0x2fe   : > { %3627 = vmatmul.msk.f32.gmra.mxu3 %vm310_vm1, %v2333_v17  ;;  %3711 = vmatmul.msk.f32.gmra.mxu1 %vm310_vm1, %v5030_v19  ;;  %v2336_v19 = vld [vmem:[#allocation2 + $0xf0] sm:$0xff] }
 0x301   : > { %v1444_v9 = vpop.f32.mrf.mxu3 }
 0x302   : > { %v5139_v5 = vadd.f32 %v1444_v9, %v5612_v58  ;;  %v5150_v9 = vpop.f32.mrf.mxu0 }
 0x304   : > { %5613 = vst [vmem:[#allocation19_spill] sm:$0xff] %v5139_v5  ;;  %v5153_v5 = vpop.f32.mrf.mxu1 }
 0x306   : > { %3628 = vmatmul.msk.f32.gmra.mxu3 %vm310_vm1, %v2334_v60 }
 0x309   : > { %v1447_v27 = vpop.f32.mrf.mxu3 }
 0x30a   : > { %v5143_v50 = vadd.f32 %v1447_v27, %v5614_v24  ;;  %v5159_v27 = vld [vmem:[%s5526_s5] ss:$0 sm:$0xff] }
 0x30c   : > { %5615 = vst [vmem:[#allocation21_spill] sm:$0xff] %v5143_v50  ;;  %v2338_v50 = vld [vmem:[#allocation2 + $0x108] sm:$0xff] }
 0x30e   : > { %3629 = vmatmul.msk.f32.gmra.mxu3 %vm310_vm1, %v2335_v49 }
 0x311   : > { %v1450_v17 = vpop.f32.mrf.mxu3 }
 0x312   : > { %v5147_v56 = vadd.f32 %v1450_v17, %v4761_v62  ;;  %v2337_v62 = vld [vmem:[#allocation2 + $0xf8] sm:$0xff]  ;;  %v5165_v17 = vld [vmem:[%s5527_s6] ss:$0 sm:$0xff] }
 0x314   : > { %5616 = vst [vmem:[#allocation23_spill] sm:$0xff] %v5147_v56  ;;  %v5176_v56 = vpop.f32.mrf.mxu1 }
 0x316   : > { %3630 = vmatmul.msk.f32.gmra.mxu3 %vm310_vm1, %v2336_v19 }
 0x319   : > { %v2470_v58 = vpop.f32.mrf.mxu3 }
 0x31a   : > { %v2566_v60 = vadd.f32 %v2470_v58, %v4786_v34 }
 0x31c   : > { %v2844_v24 = vadd.f32 %v4922_v4, %v2566_v60  ;;  %v5173_v60 = vpop.f32.mrf.mxu0 }
 0x31e   : > { %v3122_v49 = vadd.f32 %v3026_v38, %v2844_v24  ;;  %3631 = vmatmul.msk.f32.gmra.mxu3 %vm310_vm1, %v2337_v62 }
 0x320   : > { %v3158_v34 = vmul.f32 %v5159_v27, %v3122_v49  ;;  %v5185_v49 = vpop.f32.mrf.mxu2 }
 0x321   : > { %v2473_v4 = vpop.f32.mrf.mxu3 }
 0x322   : > { %v3194_v19 = vadd.f32 %v5165_v17, %v3158_v34  ;;  %v2567_v58 = vadd.f32 %v2473_v4, %v4803_v41 }
 0x324   : > { %v3226_v38 = vmax.f32 %v3194_v19, 0.0  ;;  %v2845_v24 = vadd.f32 %v4939_v48, %v2567_v58  ;;  %v5190_v35 = vpop.f32.mrf.mxu0 }
 0x326   : > { %3259 = vst.msk [vmem:[%s5178_s20] sm:$0xff] %vm3258_vm3, %v3226_v38  ;;  %v3123_v62 = vadd.f32 %v5096_v14, %v2845_v24  ;;  %3632 = vmatmul.msk.f32.gmra.mxu3 %vm310_vm1, %v2338_v50  ;;  %v2339_v38 = vld [vmem:[#allocation2 + $0x110] sm:$0xff]  ;;  %v5196_v50 = vpop.f32.mrf.mxu1 }
 0x328   : > { %v3159_v41 = vmul.f32 %v5159_v27, %v3123_v62 }
 0x329   : > { %v2476_v34 = vpop.f32.mrf.mxu3 }
 0x32a   : > { %v3195_v48 = vadd.f32 %v5165_v17, %v3159_v41  ;;  %v2568_v4 = vadd.f32 %v2476_v34, %v4822_v47  ;;  %v5201_v34 = vpop.f32.mrf.mxu2 }
 0x32c   : > { %v3227_v19 = vmax.f32 %v3195_v48, 0.0  ;;  %v2846_v58 = vadd.f32 %v4962_v61, %v2568_v4  ;;  %v2340_v4 = vld [vmem:[#allocation2 + $0x120] sm:$0xff] }
 0x32e   : > { %3260 = vst.msk [vmem:[%s5178_s20 + $0x8] sm:$0xff] %vm3258_vm3, %v3227_v19  ;;  %v3124_v14 = vadd.f32 %v5106_v29, %v2846_v58  ;;  %3633 = vmatmul.msk.f32.gmra.mxu3 %vm310_vm1, %v2339_v38  ;;  %v5208_v19 = vpop.f32.mrf.mxu0  ;;  %v5211_v38 = vpop.f32.mrf.mxu1 }
 0x330   : > { %v3160_v24 = vmul.f32 %v5159_v27, %v3124_v14 }
 0x331   : > { %v2479_v62 = vpop.f32.mrf.mxu3 }
 0x332   : > { %v3196_v47 = vadd.f32 %v5165_v17, %v3160_v24  ;;  %v2569_v41 = vadd.f32 %v2479_v62, %v4841_v55 }
 0x334   : > { %v3228_v61 = vmax.f32 %v3196_v47, 0.0  ;;  %v2847_v48 = vadd.f32 %v4981_v15, %v2569_v41  ;;  %v5216_v47 = vpop.f32.mrf.mxu2 }
 0x336   : > { %3261 = vst.msk [vmem:[%s5178_s20 + $0x10] sm:$0xff] %vm3258_vm3, %v3228_v61  ;;  %v3125_v29 = vadd.f32 %v5117_v42, %v2847_v48  ;;  %3634 = vmatmul.msk.f32.gmra.mxu3 %vm310_vm1, %v2340_v4  ;;  %v2341_v42 = vld [vmem:[#allocation2 + $0x128] sm:$0xff]  ;;  %v5223_v48 = vpop.f32.mrf.mxu0 }
 0x338   : > { %v3161_v58 = vmul.f32 %v5159_v27, %v3125_v29 }
 0x339   : > { %v2482_v55 = vpop.f32.mrf.mxu3 }
 0x33a   : > { %v3197_v14 = vadd.f32 %v5165_v17, %v3161_v58  ;;  %v2570_v24 = vadd.f32 %v2482_v55, %v4858_v63  ;;  %v5227_v58 = vpop.f32.mrf.mxu1 }
 0x33c   : > { %v3229_v62 = vmax.f32 %v3197_v14, 0.0  ;;  %v2848_v15 = vadd.f32 %v5003_v54, %v2570_v24  ;;  %v2342_v14 = vld [vmem:[#allocation2 + $0x138] sm:$0xff]  ;;  %v5234_v24 = vpop.f32.mrf.mxu2 }
 0x33e   : > { %3262 = vst.msk [vmem:[%s5178_s20 + $0x18] sm:$0xff] %vm3258_vm3, %v3229_v62  ;;  %v3126_v41 = vadd.f32 %v5125_v53, %v2848_v15  ;;  %3635 = vmatmul.msk.f32.gmra.mxu3 %vm310_vm1, %v2341_v42 }
 0x340   : > { %v3162_v61 = vmul.f32 %v5159_v27, %v3126_v41  ;;  %v5239_v41 = vpop.f32.mrf.mxu0 }
 0x341   : > { %v2485_v4 = vpop.f32.mrf.mxu3 }
 0x342   : > { %v3198_v63 = vadd.f32 %v5165_v17, %v3162_v61  ;;  %v2571_v29 = vadd.f32 %v2485_v4, %v4877_v7  ;;  %v5242_v4 = vpop.f32.mrf.mxu1 }
 0x344   : > { %v3230_v54 = vmax.f32 %v3198_v63, 0.0  ;;  %v2849_v55 = vadd.f32 %v5020_v12, %v2571_v29  ;;  %v5617_v29 = vld [vmem:[#allocation6_spill] sm:$0xff] }
 0x346   : > { %3263 = vst.msk [vmem:[%s5178_s20 + $0x20] sm:$0xff] %vm3258_vm3, %v3230_v54  ;;  %v3127_v53 = vadd.f32 %v5134_v18, %v2849_v55  ;;  %3636 = vmatmul.msk.f32.gmra.mxu3 %vm310_vm1, %v2342_v14  ;;  %v2343_v18 = vld [vmem:[#allocation2 + $0x140] sm:$0xff]  ;;  %v1739_v54 = vadd.f32 %v5617_v29, %v4918_v31  ;;  %v5251_v55 = vpop.f32.mrf.mxu2 }
 0x348   : > { %v3163_v62 = vmul.f32 %v5159_v27, %v3127_v53 }
 0x349   : > { %v2488_v15 = vpop.f32.mrf.mxu3 }
 0x34a   : > { %v3199_v7 = vadd.f32 %v5165_v17, %v3163_v62  ;;  %v2572_v42 = vadd.f32 %v2488_v15, %v4894_v16  ;;  %v5618_v62 = vld [vmem:[#allocation30_spill] sm:$0xff] }
 0x34b   : > { %v2017_v15 = vadd.f32 %v5618_v62, %v1739_v54 }
 0x34c   : > { %v3231_v61 = vmax.f32 %v3199_v7, 0.0  ;;  %v2850_v12 = vadd.f32 %v5150_v9, %v2572_v42 }
 0x34e   : > { %3264 = vst.msk [vmem:[%s5178_s20 + $0x28] sm:$0xff] %vm3258_vm3, %v3231_v61  ;;  %v3128_v63 = vadd.f32 %v5153_v5, %v2850_v12  ;;  %3637 = vmatmul.msk.f32.gmra.mxu3 %vm310_vm1, %v2343_v18  ;;  %v5257_v5 = vpop.f32.mrf.mxu0  ;;  %v2344_v61 = vld [vmem:[#allocation2 + $0x150] sm:$0xff]  ;;  %v5263_v12 = vpop.f32.mrf.mxu1  ;;  %v2295_v18 = vadd.f32 %v5185_v49, %v2017_v15 }
 0x350   : > { %v3164_v16 = vmul.f32 %v5159_v27, %v3128_v63 }
 0x351   : > { %v2491_v14 = vpop.f32.mrf.mxu3 }
 0x352   : > { %v3200_v9 = vadd.f32 %v5165_v17, %v3164_v16  ;;  %v2573_v53 = vadd.f32 %v2491_v14, %v4913_v21  ;;  %v5619_v21 = vld [vmem:[#allocation7_spill] sm:$0xff]  ;;  %v5270_v14 = vpop.f32.mrf.mxu2 }
 0x353   : > { %v1740_v63 = vadd.f32 %v5619_v21, %v4935_v30 }
 0x354   : > { %v3232_v7 = vmax.f32 %v3200_v9, 0.0  ;;  %v2851_v42 = vadd.f32 %v5173_v60, %v2573_v53  ;;  %v5620_v9 = vld [vmem:[#allocation34_spill] sm:$0xff] }
 0x355   : > { %v2018_v53 = vadd.f32 %v5620_v9, %v1740_v63  ;;  %v2346_v9 = vld [vmem:[#allocation2 + $0x168] sm:$0xff] }
 0x356   : > { %3265 = vst.msk [vmem:[%s5178_s20 + $0x30] sm:$0xff] %vm3258_vm3, %v3232_v7  ;;  %v3129_v31 = vadd.f32 %v5176_v56, %v2851_v42  ;;  %3638 = vmatmul.msk.f32.gmra.mxu3 %vm310_vm1, %v2344_v61  ;;  %v2345_v7 = vld [vmem:[#allocation2 + $0x158] sm:$0xff]  ;;  %v5278_v30 = vpop.f32.mrf.mxu0  ;;  %v5621_v42 = vld [vmem:[#allocation8_spill] sm:$0xff] }
 0x357   : > { %v2296_v15 = vadd.f32 %v5201_v34, %v2018_v53  ;;  %v1741_v61 = vadd.f32 %v5621_v42, %v4952_v2  ;;  %v5623_v53 = vld [vmem:[#allocation10_spill] sm:$0xff] }
 0x358   : > { %v3165_v29 = vmul.f32 %v5159_v27, %v3129_v31 }
 0x359   : > { %v2494_v60 = vpop.f32.mrf.mxu3 }
 0x35a   : > { %v3201_v54 = vadd.f32 %v5165_v17, %v3165_v29  ;;  %v2574_v16 = vadd.f32 %v2494_v60, %v2295_v18  ;;  %v5284_v18 = vpop.f32.mrf.mxu1  ;;  %v5622_v29 = vld [vmem:[#allocation37_spill] sm:$0xff] }
 0x35b   : > { %v2019_v60 = vadd.f32 %v5622_v29, %v1741_v61  ;;  %v5624_v61 = vld [vmem:[#allocation40_spill] sm:$0xff] }
 0x35c   : > { %v3233_v56 = vmax.f32 %v3201_v54, 0.0  ;;  %v2852_v62 = vadd.f32 %v5190_v35, %v2574_v16  ;;  %v5289_v16 = vpop.f32.mrf.mxu2 }
 0x35d   : > { %v2297_v34 = vadd.f32 %v5216_v47, %v2019_v60  ;;  %v5625_v60 = vld [vmem:[#allocation13_spill] sm:$0xff] }
 0x35e   : > { %3266 = vst.msk [vmem:[%s5178_s20 + $0x38] sm:$0xff] %vm3258_vm3, %v3233_v56  ;;  %v3130_v49 = vadd.f32 %v5196_v50, %v2852_v62  ;;  %3639 = vmatmul.msk.f32.gmra.mxu3 %vm310_vm1, %v2345_v7  ;;  %v1742_v56 = vadd.f32 %v5623_v53, %v4967_v57  ;;  %v5299_v7 = vpop.f32.mrf.mxu0  ;;  %v5626_v53 = vld [vmem:[#allocation44_spill] sm:$0xff] }
 0x360   : > { %v3166_v31 = vmul.f32 %v5159_v27, %v3130_v49 }
 0x361   : > { %v2497_v35 = vpop.f32.mrf.mxu3 }
 0x362   : > { %v3202_v21 = vadd.f32 %v5165_v17, %v3166_v31  ;;  %v2575_v63 = vadd.f32 %v2497_v35, %v2296_v15  ;;  %v5302_v42 = vpop.f32.mrf.mxu1  ;;  %v2020_v31 = vadd.f32 %v5624_v61, %v1742_v56 }
 0x364   : > { %v3234_v50 = vmax.f32 %v3202_v21, 0.0  ;;  %v2853_v54 = vadd.f32 %v5208_v19, %v2575_v63  ;;  %v2347_v21 = vld [vmem:[#allocation2 + $0x170] sm:$0xff]  ;;  %v5310_v47 = vpop.f32.mrf.mxu2  ;;  %v2628_v63 = vld [vmem:[#allocation2 + $0x199] sm:$0xff]  ;;  %v2298_v29 = vadd.f32 %v5234_v24, %v2020_v31 }
 0x365   : > { %3678 = vmatmul.msk.f32.gmra.mxu0 %vm310_vm1, %v2628_v63  ;;  %v5627_v31 = vld [vmem:[#allocation15_spill] sm:$0xff] }
 0x366   : > { %3267 = vst.msk [vmem:[%s5178_s20 + $0x40] sm:$0xff] %vm3258_vm3, %v3234_v50  ;;  %v3131_v2 = vadd.f32 %v5211_v38, %v2853_v54  ;;  %3640 = vmatmul.msk.f32.gmra.mxu3 %vm310_vm1, %v2346_v9  ;;  %v1743_v50 = vadd.f32 %v5625_v60, %v4984_v11  ;;  %v2906_v9 = vld [vmem:[#allocation2 + $0x19a] sm:$0xff] }
 0x367   : > { %3712 = vmatmul.msk.f32.gmra.mxu1 %vm310_vm1, %v2906_v9  ;;  %v2348_v11 = vld [vmem:[#allocation2 + $0x180] sm:$0xff] }
 0x368   : > { %v3167_v62 = vmul.f32 %v5159_v27, %v3131_v2  ;;  %v2021_v56 = vadd.f32 %v5626_v53, %v1743_v50 }
 0x369   : > { %v2500_v19 = vpop.f32.mrf.mxu3 }
 0x36a   : > { %v3203_v49 = vadd.f32 %v5165_v17, %v3167_v62  ;;  %v2576_v15 = vadd.f32 %v2500_v19, %v2297_v34  ;;  %v5319_v34 = vpop.f32.mrf.mxu0  ;;  %v5323_v19 = vpop.f32.mrf.mxu1  ;;  %v2299_v61 = vadd.f32 %v5251_v55, %v2021_v56 }
 0x36c   : > { %v3235_v38 = vmax.f32 %v3203_v49, 0.0  ;;  %v2854_v35 = vadd.f32 %v5223_v48, %v2576_v15  ;;  %v2629_v15 = vld [vmem:[#allocation2 + $0x1a1] sm:$0xff] }
 0x36d   : > { %3679 = vmatmul.msk.f32.gmra.mxu0 %vm310_vm1, %v2629_v15 }
 0x36e   : > { %3268 = vst.msk [vmem:[%s5178_s20 + $0x48] sm:$0xff] %vm3258_vm3, %v3235_v38  ;;  %v3132_v57 = vadd.f32 %v5227_v58, %v2854_v35  ;;  %3641 = vmatmul.msk.f32.gmra.mxu3 %vm310_vm1, %v2347_v21  ;;  %v1744_v38 = vadd.f32 %v5627_v31, %v4999_v28 }
 0x370   : > { %v3168_v54 = vmul.f32 %v5159_v27, %v3132_v57  ;;  %v2907_v57 = vld [vmem:[#allocation2 + $0x1a2] sm:$0xff] }
 0x371   : > { %v2503_v48 = vpop.f32.mrf.mxu3  ;;  %3713 = vmatmul.msk.f32.gmra.mxu1 %vm310_vm1, %v2907_v57 }
 0x372   : > { %v3204_v2 = vadd.f32 %v5165_v17, %v3168_v54  ;;  %v2577_v58 = vadd.f32 %v2503_v48, %v2298_v29  ;;  %v2796_v54 = vpop.f32.mrf.mxu0  ;;  %v2349_v48 = vld [vmem:[#allocation2 + $0x188] sm:$0xff]  ;;  %v3074_v9 = vpop.f32.mrf.mxu1 }
 0x374   : > { %v3236_v62 = vmax.f32 %v3204_v2, 0.0  ;;  %v2855_v24 = vadd.f32 %v5239_v41, %v2577_v58  ;;  %v2239_v41 = vpop.f32.mrf.mxu2  ;;  %v5629_v58 = vld [vmem:[#allocation18_spill] sm:$0xff] }
 0x375   : > { %v1745_v53 = vadd.f32 %v5629_v58, %v5016_v3 }
 0x376   : > { %3269 = vst.msk [vmem:[%s5178_s20 + $0x50] sm:$0xff] %vm3258_vm3, %v3236_v62  ;;  %v3133_v49 = vadd.f32 %v5242_v4, %v2855_v24  ;;  %3642 = vmatmul.msk.f32.gmra.mxu3 %vm310_vm1, %v2348_v11  ;;  %v5628_v4 = vld [vmem:[#allocation49_spill] sm:$0xff] }
 0x377   : > { %v2022_v60 = vadd.f32 %v5628_v4, %v1744_v38  ;;  %v2023_v15 = vadd.f32 %v4769_v33, %v1745_v53  ;;  %v5630_v38 = vld [vmem:[#allocation20_spill] sm:$0xff] }
 0x378   : > { %v3169_v35 = vmul.f32 %v5159_v27, %v3133_v49  ;;  %v2350_v49 = vld [vmem:[#allocation2 + $0x198] sm:$0xff] }
 0x379   : > { %v2506_v21 = vpop.f32.mrf.mxu3  ;;  %v2300_v2 = vadd.f32 %v5270_v14, %v2022_v60  ;;  %v2301_v31 = vadd.f32 %v5289_v16, %v2023_v15 }
 0x37a   : > { %v3205_v63 = vadd.f32 %v5165_v17, %v3169_v35  ;;  %v2578_v29 = vadd.f32 %v2506_v21, %v2299_v61  ;;  %v2799_v3 = vpop.f32.mrf.mxu0  ;;  %v1746_v35 = vadd.f32 %v5630_v38, %v5033_v37  ;;  %v3077_v57 = vpop.f32.mrf.mxu1 }
 0x37c   : > { %v3237_v50 = vmax.f32 %v3205_v63, 0.0  ;;  %v2856_v55 = vadd.f32 %v5257_v5, %v2578_v29  ;;  %v2242_v11 = vpop.f32.mrf.mxu2  ;;  %v2351_v29 = vld [vmem:[#allocation2 + $0x1a0] sm:$0xff]  ;;  %v2024_v4 = vadd.f32 %v4793_v52, %v1746_v35 }
 0x37e   : > { %3270 = vst.msk [vmem:[%s5178_s20 + $0x58] sm:$0xff] %vm3258_vm3, %v3237_v50  ;;  %v3134_v28 = vadd.f32 %v5263_v12, %v2856_v55  ;;  %3643 = vmatmul.msk.f32.gmra.mxu3 %vm310_vm1, %v2349_v48  ;;  %v2302_v37 = vadd.f32 %v5310_v47, %v2024_v4  ;;  %v5631_v55 = vld [vmem:[#allocation22_spill] sm:$0xff] }
 0x37f   : > { %v1747_v48 = vadd.f32 %v5631_v55, %v5041_v25 }
 0x380   : > { %v3170_v56 = vmul.f32 %v5159_v27, %v3134_v28 }
 0x381   : > { %v2509_v62 = vpop.f32.mrf.mxu3 }
 0x382   : > { %v3206_v5 = vadd.f32 %v5165_v17, %v3170_v56  ;;  %v2579_v24 = vadd.f32 %v2509_v62, %v2300_v2  ;;  %v2802_v2 = vpop.f32.mrf.mxu0  ;;  %v3080_v53 = vpop.f32.mrf.mxu1  ;;  %v2025_v56 = vadd.f32 %v4813_v40, %v1747_v48 }
 0x384   : > { %v3238_v61 = vmax.f32 %v3206_v5, 0.0  ;;  %v2857_v12 = vadd.f32 %v5278_v30, %v2579_v24  ;;  %v2245_v50 = vpop.f32.mrf.mxu2  ;;  %v2303_v25 = vadd.f32 %v2239_v41, %v2025_v56  ;;  %v5632_v24 = vld [vmem:[#allocation24_spill] sm:$0xff] }
 0x386   : > { %3271 = vst.msk [vmem:[%s5178_s20 + $0x60] sm:$0xff] %vm3258_vm3, %v3238_v61  ;;  %v3135_v14 = vadd.f32 %v5284_v18, %v2857_v12  ;;  %3644 = vmatmul.msk.f32.gmra.mxu3 %vm310_vm1, %v2350_v49  ;;  %v1748_v49 = vadd.f32 %v5632_v24, %v5049_v20 }
 0x388   : > { %v3171_v21 = vmul.f32 %v5159_v27, %v3135_v14 }
 0x389   : > { %v2512_v33 = vpop.f32.mrf.mxu3 }
 0x38a   : > { %v3207_v63 = vadd.f32 %v5165_v17, %v3171_v21  ;;  %v2580_v30 = vadd.f32 %v2512_v33, %v2301_v31  ;;  %v2805_v40 = vpop.f32.mrf.mxu0  ;;  %v2026_v31 = vadd.f32 %v4837_v0, %v1748_v49  ;;  %v3083_v35 = vpop.f32.mrf.mxu1  ;;  %v5633_v21 = vld [vmem:[#allocation27_spill] sm:$0xff] }
 0x38b   : > { %v1749_v20 = vadd.f32 %v5633_v21, %v5057_v13  ;;  %v5634_v13 = vld [vmem:[#allocation29_spill] sm:$0xff] }
 0x38c   : > { %v3239_v60 = vmax.f32 %v3207_v63, 0.0  ;;  %v2858_v18 = vadd.f32 %v5299_v7, %v2580_v30  ;;  %v2248_v5 = vpop.f32.mrf.mxu2  ;;  %v2304_v41 = vadd.f32 %v2242_v11, %v2026_v31 }
 0x38d   : > { %v2027_v0 = vadd.f32 %v4860_v26, %v1749_v20 }
 0x38e   : > { %3272 = vst.msk [vmem:[%s5178_s20 + $0x68] sm:$0xff] %vm3258_vm3, %v3239_v60  ;;  %v3136_v16 = vadd.f32 %v5302_v42, %v2858_v18  ;;  %3645 = vmatmul.msk.f32.gmra.mxu3 %vm310_vm1, %v2351_v29 }
 0x390   : > { %v3172_v28 = vmul.f32 %v5159_v27, %v3136_v16  ;;  %v2305_v16 = vadd.f32 %v2245_v50, %v2027_v0 }
 0x391   : > { %v2515_v52 = vpop.f32.mrf.mxu3 }
 0x392   : > { %v3208_v58 = vadd.f32 %v5165_v17, %v3172_v28  ;;  %v2581_v7 = vadd.f32 %v2515_v52, %v2302_v37  ;;  %v2808_v18 = vpop.f32.mrf.mxu0  ;;  %v3086_v11 = vpop.f32.mrf.mxu1  ;;  %v1750_v37 = vadd.f32 %v5634_v13, %v5065_v51  ;;  %v5638_v13 = vld [vmem:[#allocation42_spill] sm:$0xff] }
 0x394   : > { %v3240_v62 = vmax.f32 %v3208_v58, 0.0  ;;  %v2859_v42 = vadd.f32 %v5319_v34, %v2581_v7  ;;  %v2251_v63 = vpop.f32.mrf.mxu2  ;;  %v2028_v26 = vadd.f32 %v4884_v32, %v1750_v37 }
 0x396   : > { %3273 = vst.msk [vmem:[%s5178_s20 + $0x70] sm:$0xff] %vm3258_vm3, %v3240_v62  ;;  %v3137_v47 = vadd.f32 %v5323_v19, %v2859_v42  ;;  %v2306_v50 = vadd.f32 %v2248_v5, %v2028_v26  ;;  %v5635_v62 = vld [vmem:[#allocation32_spill] sm:$0xff] }
 0x397   : > { %v1751_v51 = vadd.f32 %v5635_v62, %v5073_v1 }
 0x398   : > { %v3173_v15 = vmul.f32 %v5159_v27, %v3137_v47 }
 0x399   : > { %v2518_v61 = vpop.f32.mrf.mxu3  ;;  %v2029_v32 = vadd.f32 %v4904_v8, %v1751_v51 }
 0x39a   : > { %v3209_v12 = vadd.f32 %v5165_v17, %v3173_v15  ;;  %v2582_v14 = vadd.f32 %v2518_v61, %v2303_v25  ;;  %v2811_v56 = vpop.f32.mrf.mxu0  ;;  %v3089_v47 = vpop.f32.mrf.mxu1 }
 0x39b   : > { %v2307_v5 = vadd.f32 %v2251_v63, %v2029_v32 }
 0x39c   : > { %v3241_v38 = vmax.f32 %v3209_v12, 0.0  ;;  %v2860_v34 = vadd.f32 %v2796_v54, %v2582_v14  ;;  %v2254_v58 = vpop.f32.mrf.mxu2  ;;  %v5636_v12 = vld [vmem:[#allocation35_spill] sm:$0xff] }
 0x39d   : > { %v1752_v1 = vadd.f32 %v5636_v12, %v5079_v45  ;;  %v5637_v45 = vld [vmem:[#allocation39_spill] sm:$0xff] }
 0x39e   : > { %3274 = vst.msk [vmem:[%s5178_s20 + $0x78] sm:$0xff] %vm3258_vm3, %v3241_v38  ;;  %v3138_v19 = vadd.f32 %v3074_v9, %v2860_v34  ;;  %v1753_v63 = vadd.f32 %v5637_v45, %v5087_v23  ;;  %v1754_v23 = vadd.f32 %v5638_v13, %v5093_v36  ;;  %v5639_v36 = vld [vmem:[#allocation46_spill] sm:$0xff] }
 0x39f   : > { %v2030_v8 = vadd.f32 %v4928_v39, %v1752_v1 }
 0x3a0   : > { %v3174_v33 = vmul.f32 %v5159_v27, %v3138_v19  ;;  %v2031_v39 = vadd.f32 %v4947_v46, %v1753_v63  ;;  %v2032_v46 = vadd.f32 %v4971_v43, %v1754_v23  ;;  %v5645_v23 = vld [vmem:[#allocation9_spill] sm:$0xff] }
 0x3a1   : > { %v2521_v30 = vpop.f32.mrf.mxu3 }
 0x3a2   : > { %v3210_v29 = vadd.f32 %v5165_v17, %v3174_v33  ;;  %v2583_v4 = vadd.f32 %v2521_v30, %v2304_v41  ;;  %v2814_v31 = vpop.f32.mrf.mxu0  ;;  %v3092_v41 = vpop.f32.mrf.mxu1  ;;  %v2308_v33 = vadd.f32 %v2254_v58, %v2030_v8  ;;  %v5641_v8 = vld [vmem:[#allocation51_spill] sm:$0xff] }
 0x3a4   : > { %v3242_v60 = vmax.f32 %v3210_v29, 0.0  ;;  %v2861_v54 = vadd.f32 %v2799_v3, %v2583_v4  ;;  %v2257_v61 = vpop.f32.mrf.mxu2 }
 0x3a6   : > { %3275 = vst.msk [vmem:[%s5178_s20 + $0x80] sm:$0xff] %vm3258_vm3, %v3242_v60  ;;  %v3139_v9 = vadd.f32 %v3077_v57, %v2861_v54 }
 0x3a8   : > { %v3175_v55 = vmul.f32 %v5159_v27, %v3139_v9 }
 0x3a9   : > { %v2524_v48 = vpop.f32.mrf.mxu3 }
 0x3aa   : > { %v3211_v28 = vadd.f32 %v5165_v17, %v3175_v55  ;;  %v2584_v52 = vadd.f32 %v2524_v48, %v2305_v16  ;;  %v2817_v60 = vpop.f32.mrf.mxu0  ;;  %v3095_v9 = vpop.f32.mrf.mxu1  ;;  %v2309_v16 = vadd.f32 %v2257_v61, %v2031_v39  ;;  %v5640_v61 = vld [vmem:[#allocation50_spill] sm:$0xff]  ;;  %v5643_v39 = vld [vmem:[#allocation16_spill] sm:$0xff] }
 0x3ac   : > { %v3243_v7 = vmax.f32 %v3211_v28, 0.0  ;;  %v2862_v3 = vadd.f32 %v2802_v2, %v2584_v52  ;;  %v2260_v20 = vpop.f32.mrf.mxu2 }
 0x3ae   : > { %3276 = vst.msk [vmem:[%s5178_s20 + $0x88] sm:$0xff] %vm3258_vm3, %v3243_v7  ;;  %v3140_v57 = vadd.f32 %v3080_v53, %v2862_v3 }
 0x3b0   : > { %v3176_v42 = vmul.f32 %v5159_v27, %v3140_v57 }
 0x3b1   : > { %v2527_v25 = vpop.f32.mrf.mxu3 }
 0x3b2   : > { %v3212_v24 = vadd.f32 %v5165_v17, %v3176_v42  ;;  %v2585_v49 = vadd.f32 %v2527_v25, %v2306_v50  ;;  %v2820_v7 = vpop.f32.mrf.mxu0  ;;  %v3098_v57 = vpop.f32.mrf.mxu1  ;;  %v1755_v50 = vadd.f32 %v5639_v36, %v5101_v10  ;;  %v1756_v10 = vadd.f32 %v5640_v61, %v5109_v22 }
 0x3b3   : > { %v1757_v22 = vadd.f32 %v5641_v8, %v5115_v6  ;;  %v5644_v6 = vld [vmem:[#allocation52_spill] sm:$0xff]  ;;  %v5653_v8 = vld [vmem:[#allocation55_spill] sm:$0xff] }
 0x3b4   : > { %v3244_v15 = vmax.f32 %v3212_v24, 0.0  ;;  %v2863_v2 = vadd.f32 %v2805_v40, %v2585_v49  ;;  %v2263_v55 = vpop.f32.mrf.mxu2  ;;  %v2033_v43 = vadd.f32 %v4988_v59, %v1755_v50  ;;  %v2034_v59 = vadd.f32 %v5009_v44, %v1756_v10  ;;  %v5642_v44 = vld [vmem:[#allocation11_spill] sm:$0xff] }
 0x3b5   : > { %v2035_v63 = vadd.f32 %v5642_v44, %v1757_v22 }
 0x3b6   : > { %3277 = vst.msk [vmem:[%s5178_s20 + $0x90] sm:$0xff] %vm3258_vm3, %v3244_v15  ;;  %v3141_v53 = vadd.f32 %v3083_v35, %v2863_v2  ;;  %v2311_v2 = vadd.f32 %v2263_v55, %v2033_v43 }
 0x3b8   : > { %v3177_v14 = vmul.f32 %v5159_v27, %v3141_v53 }
 0x3b9   : > { %v2530_v38 = vpop.f32.mrf.mxu3 }
 0x3ba   : > { %v3213_v34 = vadd.f32 %v5165_v17, %v3177_v14  ;;  %v2586_v19 = vadd.f32 %v2530_v38, %v2307_v5  ;;  %v2823_v15 = vpop.f32.mrf.mxu0  ;;  %v3101_v5 = vpop.f32.mrf.mxu1 }
 0x3bc   : > { %v3245_v21 = vmax.f32 %v3213_v34, 0.0  ;;  %v2864_v40 = vadd.f32 %v2808_v18, %v2586_v19  ;;  %v2266_v25 = vpop.f32.mrf.mxu2 }
 0x3be   : > { %3278 = vst.msk [vmem:[%s5178_s20 + $0x98] sm:$0xff] %vm3258_vm3, %v3245_v21  ;;  %v3142_v35 = vadd.f32 %v3086_v11, %v2864_v40 }
 0x3c0   : > { %v3178_v30 = vmul.f32 %v5159_v27, %v3142_v35 }
 0x3c1   : > { %v2533_v29 = vpop.f32.mrf.mxu3 }
 0x3c2   : > { %v3214_v4 = vadd.f32 %v5165_v17, %v3178_v30  ;;  %v2587_v0 = vadd.f32 %v2533_v29, %v2308_v33  ;;  %v2826_v40 = vpop.f32.mrf.mxu0  ;;  %v3104_v45 = vpop.f32.mrf.mxu1 }
 0x3c4   : > { %v3246_v54 = vmax.f32 %v3214_v4, 0.0  ;;  %v2865_v18 = vadd.f32 %v2811_v56, %v2587_v0  ;;  %v2310_v56 = vadd.f32 %v2260_v20, %v2032_v46  ;;  %v2269_v34 = vpop.f32.mrf.mxu2 }
 0x3c6   : > { %3279 = vst.msk [vmem:[%s5178_s20 + $0xa0] sm:$0xff] %vm3258_vm3, %v3246_v54  ;;  %v3143_v11 = vadd.f32 %v3089_v47, %v2865_v18  ;;  %v1758_v54 = vadd.f32 %v5644_v6, %v5643_v39  ;;  %v5655_v39 = vld [vmem:[#allocation23_spill] sm:$0xff]  ;;  %v5656_v6 = vld [vmem:[#allocation56_spill] sm:$0xff] }
 0x3c8   : > { %v3179_v37 = vmul.f32 %v5159_v27, %v3143_v11 }
 0x3c9   : > { %v2536_v48 = vpop.f32.mrf.mxu3 }
 0x3ca   : > { %v3215_v28 = vadd.f32 %v5165_v17, %v3179_v37  ;;  %v2588_v52 = vadd.f32 %v2536_v48, %v2309_v16  ;;  %v2829_v13 = vpop.f32.mrf.mxu0  ;;  %v2036_v37 = vadd.f32 %v5645_v23, %v1758_v54  ;;  %v1762_v54 = vadd.f32 %v5656_v6, %v5655_v39  ;;  %v5657_v23 = vld [vmem:[#allocation14_spill] sm:$0xff] }
 0x3cc   : > { %v3247_v58 = vmax.f32 %v3215_v28, 0.0  ;;  %v2866_v26 = vadd.f32 %v2814_v31, %v2588_v52  ;;  %v2272_v0 = vpop.f32.mrf.mxu2  ;;  %v3107_v28 = vpop.f32.mrf.mxu1 }
 0x3cd   : > { %v2314_v46 = vadd.f32 %v2272_v0, %v2036_v37  ;;  %v2040_v37 = vadd.f32 %v5657_v23, %v1762_v54 }
 0x3ce   : > { %3280 = vst.msk [vmem:[%s5178_s20 + $0xa8] sm:$0xff] %vm3258_vm3, %v3247_v58  ;;  %v3144_v3 = vadd.f32 %v3092_v41, %v2866_v26  ;;  %v2312_v41 = vadd.f32 %v2266_v25, %v2034_v59  ;;  %v5646_v58 = vld [vmem:[#allocation17_spill] sm:$0xff] }
 0x3cf   : > { %v5647_v26 = vld [vmem:[#allocation53_spill] sm:$0xff] }
 0x3d0   : > { %v3180_v62 = vmul.f32 %v5159_v27, %v3144_v3 }
 0x3d1   : > { %v2539_v51 = vpop.f32.mrf.mxu3 }
 0x3d2   : > { %v3216_v42 = vadd.f32 %v5165_v17, %v3180_v62  ;;  %v2589_v47 = vadd.f32 %v2539_v51, %v2310_v56  ;;  %v5648_v62 = vld [vmem:[#allocation43_spill] sm:$0xff]  ;;  %v2832_v25 = vpop.f32.mrf.mxu0 }
 0x3d4   : > { %v3248_v24 = vmax.f32 %v3216_v42, 0.0  ;;  %v2867_v49 = vadd.f32 %v2817_v60, %v2589_v47  ;;  %v2313_v60 = vadd.f32 %v2269_v34, %v2035_v63 }
 0x3d6   : > { %3281 = vst.msk [vmem:[%s5178_s20 + $0xb0] sm:$0xff] %vm3258_vm3, %v3248_v24  ;;  %v3145_v32 = vadd.f32 %v3095_v9, %v2867_v49  ;;  %v3110_v24 = vpop.f32.mrf.mxu1 }
 0x3d8   : > { %v3181_v53 = vmul.f32 %v5159_v27, %v3145_v32  ;;  %v5649_v32 = vld [vmem:[#allocation19_spill] sm:$0xff] }
 0x3d9   : > { %v2542_v12 = vpop.f32.mrf.mxu3 }
 0x3da   : > { %v3217_v1 = vadd.f32 %v5165_v17, %v3181_v53  ;;  %v2590_v14 = vadd.f32 %v2542_v12, %v2311_v2  ;;  %v2835_v34 = vpop.f32.mrf.mxu0 }
 0x3dc   : > { %v3249_v31 = vmax.f32 %v3217_v1, 0.0  ;;  %v2868_v38 = vadd.f32 %v2820_v7, %v2590_v14  ;;  %v1759_v7 = vadd.f32 %v5647_v26, %v5646_v58  ;;  %v5651_v1 = vld [vmem:[#allocation12_spill] sm:$0xff] }
 0x3de   : > { %3282 = vst.msk [vmem:[%s5178_s20 + $0xb8] sm:$0xff] %vm3258_vm3, %v3249_v31  ;;  %v3146_v19 = vadd.f32 %v3098_v57, %v2868_v38  ;;  %v2275_v57 = vpop.f32.mrf.mxu2  ;;  %v2037_v51 = vadd.f32 %v5648_v62, %v1759_v7 }
 0x3e0   : > { %v3182_v21 = vmul.f32 %v5159_v27, %v3146_v19  ;;  %v2315_v49 = vadd.f32 %v2275_v57, %v2037_v51 }
 0x3e1   : > { %v2545_v35 = vpop.f32.mrf.mxu3 }
 0x3e2   : > { %v3218_v20 = vadd.f32 %v5165_v17, %v3182_v21  ;;  %v2591_v33 = vadd.f32 %v2545_v35, %v2312_v41  ;;  %v5652_v41 = vld [vmem:[#allocation21_spill] sm:$0xff]  ;;  %v2838_v0 = vpop.f32.mrf.mxu0 }
 0x3e3   : > { %v1761_v22 = vadd.f32 %v5653_v8, %v5652_v41 }
 0x3e4   : > { %v3250_v30 = vmax.f32 %v3218_v20, 0.0  ;;  %v2869_v29 = vadd.f32 %v2823_v15, %v2591_v33  ;;  %v5650_v15 = vld [vmem:[#allocation54_spill] sm:$0xff] }
 0x3e5   : > { %v1760_v2 = vadd.f32 %v5650_v15, %v5649_v32 }
 0x3e6   : > { %3283 = vst.msk [vmem:[%s5178_s20 + $0xc0] sm:$0xff] %vm3258_vm3, %v3250_v30  ;;  %v3147_v4 = vadd.f32 %v3101_v5, %v2869_v29  ;;  %v2278_v12 = vpop.f32.mrf.mxu2 }
 0x3e7   : > { %v2038_v14 = vadd.f32 %v5651_v1, %v1760_v2 }
 0x3e8   : > { %v3183_v18 = vmul.f32 %v5159_v27, %v3147_v4 }
 0x3e9   : > { %v2548_v9 = vpop.f32.mrf.mxu3  ;;  %v2316_v19 = vadd.f32 %v2278_v12, %v2038_v14 }
 0x3ea   : > { %v3219_v11 = vadd.f32 %v5165_v17, %v3183_v18  ;;  %v2592_v16 = vadd.f32 %v2548_v9, %v2313_v60  ;;  %v2841_v7 = vpop.f32.mrf.mxu0 }
 0x3ec   : > { %v3251_v55 = vmax.f32 %v3219_v11, 0.0  ;;  %v2870_v48 = vadd.f32 %v2826_v40, %v2592_v16  ;;  %v3113_v40 = vpop.f32.mrf.mxu1 }
 0x3ee   : > { %3284 = vst.msk [vmem:[%s5178_s20 + $0xc8] sm:$0xff] %vm3258_vm3, %v3251_v55  ;;  %v3148_v52 = vadd.f32 %v3104_v45, %v2870_v48  ;;  %v5654_v45 = vld [vmem:[#allocation47_spill] sm:$0xff]  ;;  %v2281_v29 = vpop.f32.mrf.mxu2 }
 0x3ef   : > { %v2039_v44 = vadd.f32 %v5654_v45, %v1761_v22 }
 0x3f0   : > { %v3184_v3 = vmul.f32 %v5159_v27, %v3148_v52 }
 0x3f1   : > { %v2551_v56 = vpop.f32.mrf.mxu3  ;;  %v2317_v60 = vadd.f32 %v2281_v29, %v2039_v44 }
 0x3f2   : > { %v3220_v36 = vadd.f32 %v5165_v17, %v3184_v3  ;;  %v2593_v50 = vadd.f32 %v2551_v56, %v2314_v46 }
 0x3f4   : > { %v3252_v42 = vmax.f32 %v3220_v36, 0.0  ;;  %v2871_v47 = vadd.f32 %v2829_v13, %v2593_v50  ;;  %v3116_v11 = vpop.f32.mrf.mxu1 }
 0x3f6   : > { %3285 = vst.msk [vmem:[%s5178_s20 + $0xd0] sm:$0xff] %vm3258_vm3, %v3252_v42  ;;  %v3149_v43 = vadd.f32 %v3107_v28, %v2871_v47  ;;  %v2284_v52 = vpop.f32.mrf.mxu2 }
 0x3f7   : > { %v2318_v46 = vadd.f32 %v2284_v52, %v2040_v37 }
 0x3f8   : > { %v3185_v61 = vmul.f32 %v5159_v27, %v3149_v43 }
 0x3f9   : > { %v2554_v10 = vpop.f32.mrf.mxu3 }
 0x3fa   : > { %v3221_v53 = vadd.f32 %v5165_v17, %v3185_v61  ;;  %v2594_v5 = vadd.f32 %v2554_v10, %v2315_v49 }
 0x3fc   : > { %v3253_v59 = vmax.f32 %v3221_v53, 0.0  ;;  %v2872_v31 = vadd.f32 %v2832_v25, %v2594_v5  ;;  %v3119_v56 = vpop.f32.mrf.mxu1 }
 0x3fe   : > { %3286 = vst.msk [vmem:[%s5178_s20 + $0xd8] sm:$0xff] %vm3258_vm3, %v3253_v59  ;;  %v3150_v38 = vadd.f32 %v3110_v24, %v2872_v31 }
 0x400   : > { %v3186_v21 = vmul.f32 %v5159_v27, %v3150_v38 }
 0x401   : > { %v2557_v35 = vpop.f32.mrf.mxu3 }
 0x402   : > { %v3222_v20 = vadd.f32 %v5165_v17, %v3186_v21  ;;  %v2595_v33 = vadd.f32 %v2557_v35, %v2316_v19 }
 0x404   : > { %v3254_v63 = vmax.f32 %v3222_v20, 0.0  ;;  %v2873_v30 = vadd.f32 %v2835_v34, %v2595_v33 }
 0x406   : > { %3287 = vst.msk [vmem:[%s5178_s20 + $0xe0] sm:$0xff] %vm3258_vm3, %v3254_v63  ;;  %v3151_v4 = vadd.f32 %v3113_v40, %v2873_v30 }
 0x408   : > { %v3187_v18 = vmul.f32 %v5159_v27, %v3151_v4 }
 0x409   : > { %v2560_v9 = vpop.f32.mrf.mxu3 }
 0x40a   : > { %v3223_v16 = vadd.f32 %v5165_v17, %v3187_v18  ;;  %v2596_v13 = vadd.f32 %v2560_v9, %v2317_v60 }
 0x40c   : > { %v3255_v55 = vmax.f32 %v3223_v16, 0.0  ;;  %v2874_v48 = vadd.f32 %v2838_v0, %v2596_v13 }
 0x40e   : > { %3288 = vst.msk [vmem:[%s5178_s20 + $0xe8] sm:$0xff] %vm3258_vm3, %v3255_v55  ;;  %v3152_v28 = vadd.f32 %v3116_v11, %v2874_v48 }
 0x410   : > { %v3188_v58 = vmul.f32 %v5159_v27, %v3152_v28 }
 0x411   : > { %v2563_v26 = vpop.f32.mrf.mxu3 }
 0x412   : > { %v3224_v3 = vadd.f32 %v5165_v17, %v3188_v58  ;;  %v2597_v57 = vadd.f32 %v2563_v26, %v2318_v46 }
 0x414   : > { %v3256_v36 = vmax.f32 %v3224_v3, 0.0  ;;  %v2875_v50 = vadd.f32 %v2841_v7, %v2597_v57 }
 0x416   : > { %3289 = vst.msk [vmem:[%s5178_s20 + $0xf0] sm:$0xff] %vm3258_vm3, %v3256_v36  ;;  %v3153_v62 = vadd.f32 %v3119_v56, %v2875_v50 }
 0x418   : > { %v3189_v51 = vmul.f32 %v5159_v27, %v3153_v62 }
 0x41a   : > { %v3225_v42 = vadd.f32 %v5165_v17, %v3189_v51 }
 0x41c   : > { %v3257_v47 = vmax.f32 %v3225_v42, 0.0 }
 0x41e   : > { %3290 = vst.msk [vmem:[%s5178_s20 + $0xf8] sm:$0xff] %vm3258_vm3, %v3257_v47 }
 0x41f   : > { %3796 = shalt.err (!%p3793_p3)
}
 0x420   : > { %s3834_s16 = smov 128   ;;  %s3835_s20 = smov 8  }
 0x421   : > { %3723 = dma.vmem_to_hbm [thread:$0]  (%p3914_p5), %s3305_s8, 4096, %s3307_s9, %s3292_s28, %s3834_s16, %s3834_s16, %s3835_s20  }
 0x422 PF: > { %p3729_p4 = scmp.ge.s32.totalorder %s3831_s27, 2  ;;  %s3321_s22 = sand.u32 1, %s3819_s24  }
 0x423   : > { %s3322_s23 = scalar_lea.sflag [#allocation4], %s3321_s22 }
 0x424   : > { %p3726_p7 = pnand %p3729_p4, %p3918_p6 }
 0x426   : > { %p3727_p8 = pneg %p3726_p7 }
 0x428   : > { %3814 = dma.done.wait (%p3727_p8), %s3322_s23, 4096  }
 0x429   : > { %3816 = vsyncadd (%p3727_p8), %s3322_s23, 4294963200  ;;  %p17_p9 = scmp.ge.s32.totalorder %s3901_s30, 4   ;;  %s5658_s24 = smov %s3823_s25 }
 0x42a   : > { %s5659_s25 = smov %s3827_s26  ;;  %s5660_s26 = smov %s3912_s10 }
 0x42b   : > { %s5661_s27 = smov %s3901_s30  ;;  %19 = sbr.rel (!%p17_p9) target bundleno = 3 (0x3), region = 93 }
 0x430   :  { %3328 = vsyncpa [#allocation4], 1 }
 0x431   :  { %3330 = vsyncpa [#allocation4 + $0x1], 1 }

</bundles_post_ra>
